<compile_context>
chip_gen: v5e
topology: v5e:2x2
jax: 0.10.0
libtpu: 0.0.40
codegen_flags: <defaults>
</compile_context>

<pallas_src>
import numpy as np
import jax
import jax.numpy as jnp
from jax import lax
from jax.experimental import pallas as pl
from jax.experimental.pallas import tpu as pltpu


# ----------------------------------------------------------------------------------
# numpy re-implementations of scipy.signal.butter (order-2 bandpass) and tukey window
# (host-side coefficient computation only; baked into the kernel as constants)
# ----------------------------------------------------------------------------------
def butter_bandpass_coeffs(order, fmin, fmax, fs):
    wn = np.array([fmin, fmax], dtype=np.float64) / (fs / 2.0)
    fs_i = 2.0
    warped = 2.0 * fs_i * np.tan(np.pi * wn / fs_i)
    # analog Butterworth prototype (buttap)
    p = -np.exp(1j * np.pi * np.arange(-order + 1, order, 2) / (2.0 * order))
    z = np.array([], dtype=complex)
    k = 1.0
    # lp2bp_zpk
    bw = warped[1] - warped[0]
    wo = np.sqrt(warped[0] * warped[1])
    degree = len(p) - len(z)
    z_lp = z * bw / 2.0
    p_lp = p * bw / 2.0
    z_bp = np.concatenate([z_lp + np.sqrt(z_lp**2 - wo**2),
                           z_lp - np.sqrt(z_lp**2 - wo**2)])
    p_bp = np.concatenate([p_lp + np.sqrt(p_lp**2 - wo**2),
                           p_lp - np.sqrt(p_lp**2 - wo**2)])
    z_bp = np.append(z_bp, np.zeros(degree))
    k_bp = k * bw**degree
    # bilinear_zpk
    fs2 = 2.0 * fs_i
    z_z = (fs2 + z_bp) / (fs2 - z_bp)
    p_z = (fs2 + p_bp) / (fs2 - p_bp)
    z_z = np.append(z_z, -np.ones(len(p_bp) - len(z_bp)))
    k_z = k_bp * np.real(np.prod(fs2 - z_bp) / np.prod(fs2 - p_bp))
    b = np.real(k_z * np.poly(z_z))
    a = np.real(np.poly(p_z))
    return b, a


def tukey_window(M, alpha):
    if alpha <= 0:
        return np.ones(M, dtype=np.float64)
    if alpha >= 1:
        n = np.arange(M)
        return 0.5 * (1.0 - np.cos(2.0 * np.pi * n / (M - 1)))
    n = np.arange(M)
    width = int(np.floor(alpha * (M - 1) / 2.0))
    n1 = n[0:width + 1]
    n2 = n[width + 1:M - width - 1]
    n3 = n[M - width - 1:]
    w1 = 0.5 * (1.0 + np.cos(np.pi * (-1.0 + 2.0 * n1 / alpha / (M - 1))))
    w2 = np.ones(n2.shape[0])
    w3 = 0.5 * (1.0 + np.cos(np.pi * (-2.0 / alpha + 1.0 + 2.0 * n3 / alpha / (M - 1))))
    return np.concatenate((w1, w2, w3))


# ----------------------------------------------------------------------------------
# Pallas kernel
# ----------------------------------------------------------------------------------
def make_filtering_kernel(b, a, T, TR):
    a = np.asarray(a, np.float64)
    b = np.asarray(b, np.float64)
    bn = [float(v) for v in (b / a[0])]
    an = [float(v) for v in (a / a[0])]
    assert len(bn) == 5 and len(an) == 5  # order-4 IIR (order-2 bandpass)
    b0, b1, b2, b3, b4 = bn
    _, a1, a2, a3, a4 = an

    NG = T // 8          # number of fully unrolled 8-step groups
    rem = T - NG * 8     # leftover steps (static)

    def step(x0, xh, yh):
        """One IIR step. xh/yh are 4-tuples of (1, TR) vregs (register-carried state)."""
        x1, x2, x3, x4 = xh
        y1, y2, y3, y4 = yh
        acc = (b0 * x0 + b1 * x1 + b2 * x2 + b3 * x3 + b4 * x4
               - a1 * y1 - a2 * y2 - a3 * y3 - a4 * y4)
        return acc, (x0, x1, x2, x3), (acc, y1, y2, y3)

    def kernel(data_ref, taper_ref, out_ref, x_vmem, y1_vmem):
        # ---- preprocessing: demean / normalize / taper (one lane-dense pass) ----
        xf = data_ref[...]                                   # (T, TR)
        mean = jnp.mean(xf, axis=0, keepdims=True)           # (1, TR)
        xc = xf - mean
        maxv = jnp.max(jnp.abs(xc), axis=0, keepdims=True)   # (1, TR)
        maxv = jnp.where(maxv == 0.0, 1.0, maxv)
        inv_max = 1.0 / maxv
        x_vmem[...] = (xc * inv_max) * taper_ref[...]        # taper (T,1) lane-broadcast

        zrow = jnp.zeros((1, TR), jnp.float32)

        # ---- forward IIR pass: state carried in vregs, 8 steps per group ----
        def fwd_group(g, carry):
            xh, yh = carry[:4], carry[4:]
            base = pl.multiple_of(g * 8, 8)
            xb = x_vmem[pl.ds(base, 8), :]                   # one aligned (8, TR) load
            rows = []
            for u in range(8):                               # fully unrolled
                acc, xh, yh = step(xb[u:u + 1, :], xh, yh)
                rows.append(acc)
            y1_vmem[pl.ds(base, 8), :] = jnp.concatenate(rows, axis=0)  # one (8,TR) store
            return xh + yh

        carry = (zrow,) * 8
        if NG > 0:
            carry = lax.fori_loop(0, NG, fwd_group, carry)
        xh, yh = carry[:4], carry[4:]
        for u in range(rem):                                 # static remainder
            t = NG * 8 + u
            acc, xh, yh = step(x_vmem[t:t + 1, :], xh, yh)
            y1_vmem[t:t + 1, :] = acc

        # ---- backward IIR pass on the time-reversed forward output ----
        # step s reads y1[T-1-s]; its result belongs at output row T-1-s, so each
        # group writes one lane-dense (8, TR) block straight to out_ref (scaled).
        rh = (zrow,) * 4
        zh = (zrow,) * 4
        for s in range(rem):                                 # static remainder first
            j = T - 1 - s
            acc, rh, zh = step(y1_vmem[j:j + 1, :], rh, zh)
            out_ref[j:j + 1, :] = (acc * maxv).astype(out_ref.dtype)

        def bwd_group(g, carry):
            rh, zh = carry[:4], carry[4:]
            base = pl.multiple_of((NG - 1 - g) * 8, 8)
            yb = y1_vmem[pl.ds(base, 8), :]                  # one aligned (8, TR) load
            rows = [None] * 8
            for u in range(8):                               # fully unrolled
                acc, rh, zh = step(yb[7 - u:8 - u, :], rh, zh)
                rows[7 - u] = acc
            out_ref[pl.ds(base, 8), :] = (
                jnp.concatenate(rows, axis=0) * maxv).astype(out_ref.dtype)
            return rh + zh

        if NG > 0:
            lax.fori_loop(0, NG, bwd_group, rh + zh)

    return kernel


def filtering_forward(data, b, a, taper, tr=128):
    """data: (B, C, T) float32 -> (B, C, T) float32."""
    B, C, T = data.shape
    R = B * C
    RP = ((R + tr - 1) // tr) * tr                           # pad traces to lane-dense tiles

    x = jnp.transpose(jnp.reshape(data, (R, T)), (1, 0)).astype(jnp.float32)  # (T, R)
    if RP != R:
        x = jnp.pad(x, ((0, 0), (0, RP - R)))
    taper_col = jnp.asarray(taper, dtype=jnp.float32).reshape(T, 1)

    out = pl.pallas_call(
        make_filtering_kernel(b, a, T, tr),
        out_shape=jax.ShapeDtypeStruct((T, RP), jnp.float32),
        grid=(RP // tr,),
        in_specs=[
            pl.BlockSpec((T, tr), lambda r: (0, r)),
            pl.BlockSpec((T, 1), lambda r: (0, 0)),
        ],
        out_specs=pl.BlockSpec((T, tr), lambda r: (0, r)),
        scratch_shapes=[
            pltpu.VMEM((T, tr), jnp.float32),  # preprocessed input
            pltpu.VMEM((T, tr), jnp.float32),  # forward IIR output
        ],
        compiler_params=pltpu.CompilerParams(
            dimension_semantics=("parallel",)),   # independent trace tiles (2 TCs on v7x)
    )(x, taper_col)

    out = out[:, :R]
    return jnp.reshape(jnp.transpose(out, (1, 0)), (B, C, T))


# ----------------------------------------------------------------------------------
# pure-numpy reference (matches torch/torchaudio semantics) for verification
# ----------------------------------------------------------------------------------
def _lfilter_np(x, b, a):
    bn = b / a[0]
    an = a / a[0]
    y = np.zeros_like(x)
    T = x.shape[-1]
    for t in range(T):
        acc = bn[0] * x[..., t]
        for k in range(1, len(bn)):
            if t - k >= 0:
                acc = acc + bn[k] * x[..., t - k] - an[k] * y[..., t - k]
        y[..., t] = acc
    return y


def reference_forward(data, b, a, taper):
    data = data - data.mean(axis=-1, keepdims=True)
    maxv = np.abs(data).max(axis=-1, keepdims=True)
    maxv[maxv == 0.0] = 1.0
    x = (data / maxv) * taper
    y1 = _lfilter_np(x, b, a)
    y2 = _lfilter_np(y1[..., ::-1], b, a)[..., ::-1]
    return y2 * maxv


if __name__ == "__main__":
    # Module config (Filtering(fmin=1, fmax=10, fs=100, 'bandpass'))
    fmin, fmax, fs, alpha = 1.0, 10.0, 100.0, 0.01
    B, C, T = 2, 4, 256

    b_coef, a_coef = butter_bandpass_coeffs(2, fmin, fmax, fs)
    taper = tukey_window(T, alpha * 3000.0 / T)

    key = jax.random.PRNGKey(0)
    data = jax.random.normal(key, (B, C, T), dtype=jnp.float32)

    out = filtering_forward(data, b_coef, a_coef, taper)
    out = jax.block_until_ready(out)

    # NOTE: kernel recurrence runs in f32; reference in f64. For very long traces
    # (T in the thousands) the order-4 IIR may drift beyond this tolerance.
    ref = reference_forward(np.asarray(data, dtype=np.float64), b_coef, a_coef, taper)
    np.testing.assert_allclose(np.asarray(out), ref, rtol=2e-3, atol=2e-3)

    print("KERNEL_OK")
</pallas_src>

<mosaic_0001>
module attributes {stable_mosaic.version = 11 : i64} {
  func.func @kernel(%arg0: i32, %arg1: memref<256x128xf32, #tpu.memory_space<vmem>>, %arg2: memref<256x1xf32, #tpu.memory_space<vmem>>, %arg3: memref<256x128xf32, #tpu.memory_space<vmem>>, %arg4: memref<256x128xf32, #tpu.memory_space<vmem>>, %arg5: memref<256x128xf32, #tpu.memory_space<vmem>>) attributes {dimension_semantics = [#tpu.dimension_semantics<parallel>], iteration_bounds = array<i64: 1>, scalar_prefetch = 0 : i64, scratch_operands = 2 : i64, tpu.core_type = #tpu.core_type<tc>, window_params = [{transform_indices = @transform_0, window_bounds = array<i64: 256, 128>}, {pipeline_mode = #tpu.pipeline_mode<synchronous>, transform_indices = @transform_1, window_bounds = array<i64: 256, 1>}, {transform_indices = @transform_2, window_bounds = array<i64: 256, 128>}]} {
    %c0 = arith.constant 0 : index
    %c0_0 = arith.constant 0 : index
    %0 = vector.load %arg1[%c0, %c0_0] : memref<256x128xf32, #tpu.memory_space<vmem>>, vector<256x128xf32>
    %cst = arith.constant dense<0.000000e+00> : vector<128xf32>
    %1 = vector.multi_reduction <add>, %0, %cst [0] : vector<256x128xf32> to vector<128xf32>
    %2 = vector.shape_cast %1 : vector<128xf32> to vector<1x128xf32>
    %cst_1 = arith.constant 2.560000e+02 : f32
    %3 = vector.broadcast %cst_1 : f32 to vector<1x128xf32>
    %4 = arith.divf %2, %3 : vector<1x128xf32>
    %5 = vector.broadcast %4 : vector<1x128xf32> to vector<256x128xf32>
    %6 = arith.subf %0, %5 : vector<256x128xf32>
    %7 = math.absf %6 : vector<256x128xf32>
    %cst_2 = arith.constant dense<0xFF800000> : vector<128xf32>
    %8 = vector.multi_reduction <maximumf>, %7, %cst_2 [0] : vector<256x128xf32> to vector<128xf32>
    %9 = vector.shape_cast %8 : vector<128xf32> to vector<1x128xf32>
    %cst_3 = arith.constant 0.000000e+00 : f32
    %10 = vector.broadcast %cst_3 : f32 to vector<1x128xf32>
    %11 = arith.cmpf oeq, %9, %10 : vector<1x128xf32>
    %cst_4 = arith.constant 1.000000e+00 : f32
    %12 = vector.broadcast %cst_4 : f32 to vector<1x128xf32>
    %13 = arith.select %11, %12, %9 : vector<1x128xi1>, vector<1x128xf32>
    %cst_5 = arith.constant 1.000000e+00 : f32
    %14 = vector.broadcast %cst_5 : f32 to vector<1x128xf32>
    %15 = arith.divf %14, %13 : vector<1x128xf32>
    %16 = vector.broadcast %15 : vector<1x128xf32> to vector<256x128xf32>
    %17 = arith.mulf %6, %16 : vector<256x128xf32>
    %c0_6 = arith.constant 0 : index
    %c0_7 = arith.constant 0 : index
    %18 = vector.load %arg2[%c0_6, %c0_7] : memref<256x1xf32, #tpu.memory_space<vmem>>, vector<256x1xf32>
    %19 = vector.broadcast %18 : vector<256x1xf32> to vector<256x128xf32>
    %20 = arith.mulf %17, %19 : vector<256x128xf32>
    %c0_8 = arith.constant 0 : index
    %c0_9 = arith.constant 0 : index
    %21 = vector.load %arg4[%c0_8, %c0_9] : memref<256x128xf32, #tpu.memory_space<vmem>>, vector<256x128xf32>
    tpu.vector_store %arg4[%c0_8, %c0_9], %20 {strides = array<i32>} : memref<256x128xf32, #tpu.memory_space<vmem>>, vector<256x128xf32>,
    %cst_10 = arith.constant 0.000000e+00 : f32
    %22 = vector.broadcast %cst_10 : f32 to vector<1x128xf32>
    %c0_i32 = arith.constant 0 : i32
    %c32_i32 = arith.constant 32 : i32
    %23 = arith.addi %c0_i32, %c32_i32 : i32
    %c1_i32 = arith.constant 1 : i32
    %24:8 = scf.for %arg6 = %c0_i32 to %23 step %c1_i32 iter_args(%arg7 = %22, %arg8 = %22, %arg9 = %22, %arg10 = %22, %arg11 = %22, %arg12 = %22, %arg13 = %22, %arg14 = %22) -> (vector<1x128xf32>, vector<1x128xf32>, vector<1x128xf32>, vector<1x128xf32>, vector<1x128xf32>, vector<1x128xf32>, vector<1x128xf32>, vector<1x128xf32>)  : i32 {
      %c8_i32 = arith.constant 8 : i32
      %27 = arith.muli %arg6, %c8_i32 : i32
      %28 = tpu.assume_multiple %27, 8 : i32
      %29 = arith.index_cast %28 : i32 to index
      %c0_16 = arith.constant 0 : index
      %30 = vector.load %arg4[%29, %c0_16] : memref<256x128xf32, #tpu.memory_space<vmem>>, vector<8x128xf32>
      %31 = vector.extract_strided_slice %30 {offsets = [0, 0], sizes = [1, 128], strides = [1, 1]} : vector<8x128xf32> to vector<1x128xf32>
      %cst_17 = arith.constant 0.0564484634 : f32
      %32 = vector.broadcast %cst_17 : f32 to vector<1x128xf32>
      %33 = arith.mulf %32, %31 : vector<1x128xf32>
      %cst_18 = arith.constant 0.000000e+00 : f32
      %34 = vector.broadcast %cst_18 : f32 to vector<1x128xf32>
      %35 = arith.mulf %34, %arg7 : vector<1x128xf32>
      %36 = arith.addf %33, %35 : vector<1x128xf32>
      %cst_19 = arith.constant -0.112896927 : f32
      %37 = vector.broadcast %cst_19 : f32 to vector<1x128xf32>
      %38 = arith.mulf %37, %arg8 : vector<1x128xf32>
      %39 = arith.addf %36, %38 : vector<1x128xf32>
      %cst_20 = arith.constant 0.000000e+00 : f32
      %40 = vector.broadcast %cst_20 : f32 to vector<1x128xf32>
      %41 = arith.mulf %40, %arg9 : vector<1x128xf32>
      %42 = arith.addf %39, %41 : vector<1x128xf32>
      %cst_21 = arith.constant 0.0564484634 : f32
      %43 = vector.broadcast %cst_21 : f32 to vector<1x128xf32>
      %44 = arith.mulf %43, %arg10 : vector<1x128xf32>
      %45 = arith.addf %42, %44 : vector<1x128xf32>
      %cst_22 = arith.constant -3.15946341 : f32
      %46 = vector.broadcast %cst_22 : f32 to vector<1x128xf32>
      %47 = arith.mulf %46, %arg11 : vector<1x128xf32>
      %48 = arith.subf %45, %47 : vector<1x128xf32>
      %cst_23 = arith.constant 3.79268432 : f32
      %49 = vector.broadcast %cst_23 : f32 to vector<1x128xf32>
      %50 = arith.mulf %49, %arg12 : vector<1x128xf32>
      %51 = arith.subf %48, %50 : vector<1x128xf32>
      %cst_24 = arith.constant -2.08257341 : f32
      %52 = vector.broadcast %cst_24 : f32 to vector<1x128xf32>
      %53 = arith.mulf %52, %arg13 : vector<1x128xf32>
      %54 = arith.subf %51, %53 : vector<1x128xf32>
      %cst_25 = arith.constant 0.450445443 : f32
      %55 = vector.broadcast %cst_25 : f32 to vector<1x128xf32>
      %56 = arith.mulf %55, %arg14 : vector<1x128xf32>
      %57 = arith.subf %54, %56 : vector<1x128xf32>
      %58 = vector.extract_strided_slice %30 {offsets = [1, 0], sizes = [1, 128], strides = [1, 1]} : vector<8x128xf32> to vector<1x128xf32>
      %cst_26 = arith.constant 0.0564484634 : f32
      %59 = vector.broadcast %cst_26 : f32 to vector<1x128xf32>
      %60 = arith.mulf %59, %58 : vector<1x128xf32>
      %cst_27 = arith.constant 0.000000e+00 : f32
      %61 = vector.broadcast %cst_27 : f32 to vector<1x128xf32>
      %62 = arith.mulf %61, %31 : vector<1x128xf32>
      %63 = arith.addf %60, %62 : vector<1x128xf32>
      %cst_28 = arith.constant -0.112896927 : f32
      %64 = vector.broadcast %cst_28 : f32 to vector<1x128xf32>
      %65 = arith.mulf %64, %arg7 : vector<1x128xf32>
      %66 = arith.addf %63, %65 : vector<1x128xf32>
      %cst_29 = arith.constant 0.000000e+00 : f32
      %67 = vector.broadcast %cst_29 : f32 to vector<1x128xf32>
      %68 = arith.mulf %67, %arg8 : vector<1x128xf32>
      %69 = arith.addf %66, %68 : vector<1x128xf32>
      %cst_30 = arith.constant 0.0564484634 : f32
      %70 = vector.broadcast %cst_30 : f32 to vector<1x128xf32>
      %71 = arith.mulf %70, %arg9 : vector<1x128xf32>
      %72 = arith.addf %69, %71 : vector<1x128xf32>
      %cst_31 = arith.constant -3.15946341 : f32
      %73 = vector.broadcast %cst_31 : f32 to vector<1x128xf32>
      %74 = arith.mulf %73, %57 : vector<1x128xf32>
      %75 = arith.subf %72, %74 : vector<1x128xf32>
      %cst_32 = arith.constant 3.79268432 : f32
      %76 = vector.broadcast %cst_32 : f32 to vector<1x128xf32>
      %77 = arith.mulf %76, %arg11 : vector<1x128xf32>
      %78 = arith.subf %75, %77 : vector<1x128xf32>
      %cst_33 = arith.constant -2.08257341 : f32
      %79 = vector.broadcast %cst_33 : f32 to vector<1x128xf32>
      %80 = arith.mulf %79, %arg12 : vector<1x128xf32>
      %81 = arith.subf %78, %80 : vector<1x128xf32>
      %cst_34 = arith.constant 0.450445443 : f32
      %82 = vector.broadcast %cst_34 : f32 to vector<1x128xf32>
      %83 = arith.mulf %82, %arg13 : vector<1x128xf32>
      %84 = arith.subf %81, %83 : vector<1x128xf32>
      %85 = vector.extract_strided_slice %30 {offsets = [2, 0], sizes = [1, 128], strides = [1, 1]} : vector<8x128xf32> to vector<1x128xf32>
      %cst_35 = arith.constant 0.0564484634 : f32
      %86 = vector.broadcast %cst_35 : f32 to vector<1x128xf32>
      %87 = arith.mulf %86, %85 : vector<1x128xf32>
      %cst_36 = arith.constant 0.000000e+00 : f32
      %88 = vector.broadcast %cst_36 : f32 to vector<1x128xf32>
      %89 = arith.mulf %88, %58 : vector<1x128xf32>
      %90 = arith.addf %87, %89 : vector<1x128xf32>
      %cst_37 = arith.constant -0.112896927 : f32
      %91 = vector.broadcast %cst_37 : f32 to vector<1x128xf32>
      %92 = arith.mulf %91, %31 : vector<1x128xf32>
      %93 = arith.addf %90, %92 : vector<1x128xf32>
      %cst_38 = arith.constant 0.000000e+00 : f32
      %94 = vector.broadcast %cst_38 : f32 to vector<1x128xf32>
      %95 = arith.mulf %94, %arg7 : vector<1x128xf32>
      %96 = arith.addf %93, %95 : vector<1x128xf32>
      %cst_39 = arith.constant 0.0564484634 : f32
      %97 = vector.broadcast %cst_39 : f32 to vector<1x128xf32>
      %98 = arith.mulf %97, %arg8 : vector<1x128xf32>
      %99 = arith.addf %96, %98 : vector<1x128xf32>
      %cst_40 = arith.constant -3.15946341 : f32
      %100 = vector.broadcast %cst_40 : f32 to vector<1x128xf32>
      %101 = arith.mulf %100, %84 : vector<1x128xf32>
      %102 = arith.subf %99, %101 : vector<1x128xf32>
      %cst_41 = arith.constant 3.79268432 : f32
      %103 = vector.broadcast %cst_41 : f32 to vector<1x128xf32>
      %104 = arith.mulf %103, %57 : vector<1x128xf32>
      %105 = arith.subf %102, %104 : vector<1x128xf32>
      %cst_42 = arith.constant -2.08257341 : f32
      %106 = vector.broadcast %cst_42 : f32 to vector<1x128xf32>
      %107 = arith.mulf %106, %arg11 : vector<1x128xf32>
      %108 = arith.subf %105, %107 : vector<1x128xf32>
      %cst_43 = arith.constant 0.450445443 : f32
      %109 = vector.broadcast %cst_43 : f32 to vector<1x128xf32>
      %110 = arith.mulf %109, %arg12 : vector<1x128xf32>
      %111 = arith.subf %108, %110 : vector<1x128xf32>
      %112 = vector.extract_strided_slice %30 {offsets = [3, 0], sizes = [1, 128], strides = [1, 1]} : vector<8x128xf32> to vector<1x128xf32>
      %cst_44 = arith.constant 0.0564484634 : f32
      %113 = vector.broadcast %cst_44 : f32 to vector<1x128xf32>
      %114 = arith.mulf %113, %112 : vector<1x128xf32>
      %cst_45 = arith.constant 0.000000e+00 : f32
      %115 = vector.broadcast %cst_45 : f32 to vector<1x128xf32>
      %116 = arith.mulf %115, %85 : vector<1x128xf32>
      %117 = arith.addf %114, %116 : vector<1x128xf32>
      %cst_46 = arith.constant -0.112896927 : f32
      %118 = vector.broadcast %cst_46 : f32 to vector<1x128xf32>
      %119 = arith.mulf %118, %58 : vector<1x128xf32>
      %120 = arith.addf %117, %119 : vector<1x128xf32>
      %cst_47 = arith.constant 0.000000e+00 : f32
      %121 = vector.broadcast %cst_47 : f32 to vector<1x128xf32>
      %122 = arith.mulf %121, %31 : vector<1x128xf32>
      %123 = arith.addf %120, %122 : vector<1x128xf32>
      %cst_48 = arith.constant 0.0564484634 : f32
      %124 = vector.broadcast %cst_48 : f32 to vector<1x128xf32>
      %125 = arith.mulf %124, %arg7 : vector<1x128xf32>
      %126 = arith.addf %123, %125 : vector<1x128xf32>
      %cst_49 = arith.constant -3.15946341 : f32
      %127 = vector.broadcast %cst_49 : f32 to vector<1x128xf32>
      %128 = arith.mulf %127, %111 : vector<1x128xf32>
      %129 = arith.subf %126, %128 : vector<1x128xf32>
      %cst_50 = arith.constant 3.79268432 : f32
      %130 = vector.broadcast %cst_50 : f32 to vector<1x128xf32>
      %131 = arith.mulf %130, %84 : vector<1x128xf32>
      %132 = arith.subf %129, %131 : vector<1x128xf32>
      %cst_51 = arith.constant -2.08257341 : f32
      %133 = vector.broadcast %cst_51 : f32 to vector<1x128xf32>
      %134 = arith.mulf %133, %57 : vector<1x128xf32>
      %135 = arith.subf %132, %134 : vector<1x128xf32>
      %cst_52 = arith.constant 0.450445443 : f32
      %136 = vector.broadcast %cst_52 : f32 to vector<1x128xf32>
      %137 = arith.mulf %136, %arg11 : vector<1x128xf32>
      %138 = arith.subf %135, %137 : vector<1x128xf32>
      %139 = vector.extract_strided_slice %30 {offsets = [4, 0], sizes = [1, 128], strides = [1, 1]} : vector<8x128xf32> to vector<1x128xf32>
      %cst_53 = arith.constant 0.0564484634 : f32
      %140 = vector.broadcast %cst_53 : f32 to vector<1x128xf32>
      %141 = arith.mulf %140, %139 : vector<1x128xf32>
      %cst_54 = arith.constant 0.000000e+00 : f32
      %142 = vector.broadcast %cst_54 : f32 to vector<1x128xf32>
      %143 = arith.mulf %142, %112 : vector<1x128xf32>
      %144 = arith.addf %141, %143 : vector<1x128xf32>
      %cst_55 = arith.constant -0.112896927 : f32
      %145 = vector.broadcast %cst_55 : f32 to vector<1x128xf32>
      %146 = arith.mulf %145, %85 : vector<1x128xf32>
      %147 = arith.addf %144, %146 : vector<1x128xf32>
      %cst_56 = arith.constant 0.000000e+00 : f32
      %148 = vector.broadcast %cst_56 : f32 to vector<1x128xf32>
      %149 = arith.mulf %148, %58 : vector<1x128xf32>
      %150 = arith.addf %147, %149 : vector<1x128xf32>
      %cst_57 = arith.constant 0.0564484634 : f32
      %151 = vector.broadcast %cst_57 : f32 to vector<1x128xf32>
      %152 = arith.mulf %151, %31 : vector<1x128xf32>
      %153 = arith.addf %150, %152 : vector<1x128xf32>
      %cst_58 = arith.constant -3.15946341 : f32
      %154 = vector.broadcast %cst_58 : f32 to vector<1x128xf32>
      %155 = arith.mulf %154, %138 : vector<1x128xf32>
      %156 = arith.subf %153, %155 : vector<1x128xf32>
      %cst_59 = arith.constant 3.79268432 : f32
      %157 = vector.broadcast %cst_59 : f32 to vector<1x128xf32>
      %158 = arith.mulf %157, %111 : vector<1x128xf32>
      %159 = arith.subf %156, %158 : vector<1x128xf32>
      %cst_60 = arith.constant -2.08257341 : f32
      %160 = vector.broadcast %cst_60 : f32 to vector<1x128xf32>
      %161 = arith.mulf %160, %84 : vector<1x128xf32>
      %162 = arith.subf %159, %161 : vector<1x128xf32>
      %cst_61 = arith.constant 0.450445443 : f32
      %163 = vector.broadcast %cst_61 : f32 to vector<1x128xf32>
      %164 = arith.mulf %163, %57 : vector<1x128xf32>
      %165 = arith.subf %162, %164 : vector<1x128xf32>
      %166 = vector.extract_strided_slice %30 {offsets = [5, 0], sizes = [1, 128], strides = [1, 1]} : vector<8x128xf32> to vector<1x128xf32>
      %cst_62 = arith.constant 0.0564484634 : f32
      %167 = vector.broadcast %cst_62 : f32 to vector<1x128xf32>
      %168 = arith.mulf %167, %166 : vector<1x128xf32>
      %cst_63 = arith.constant 0.000000e+00 : f32
      %169 = vector.broadcast %cst_63 : f32 to vector<1x128xf32>
      %170 = arith.mulf %169, %139 : vector<1x128xf32>
      %171 = arith.addf %168, %170 : vector<1x128xf32>
      %cst_64 = arith.constant -0.112896927 : f32
      %172 = vector.broadcast %cst_64 : f32 to vector<1x128xf32>
      %173 = arith.mulf %172, %112 : vector<1x128xf32>
      %174 = arith.addf %171, %173 : vector<1x128xf32>
      %cst_65 = arith.constant 0.000000e+00 : f32
      %175 = vector.broadcast %cst_65 : f32 to vector<1x128xf32>
      %176 = arith.mulf %175, %85 : vector<1x128xf32>
      %177 = arith.addf %174, %176 : vector<1x128xf32>
      %cst_66 = arith.constant 0.0564484634 : f32
      %178 = vector.broadcast %cst_66 : f32 to vector<1x128xf32>
      %179 = arith.mulf %178, %58 : vector<1x128xf32>
      %180 = arith.addf %177, %179 : vector<1x128xf32>
      %cst_67 = arith.constant -3.15946341 : f32
      %181 = vector.broadcast %cst_67 : f32 to vector<1x128xf32>
      %182 = arith.mulf %181, %165 : vector<1x128xf32>
      %183 = arith.subf %180, %182 : vector<1x128xf32>
      %cst_68 = arith.constant 3.79268432 : f32
      %184 = vector.broadcast %cst_68 : f32 to vector<1x128xf32>
      %185 = arith.mulf %184, %138 : vector<1x128xf32>
      %186 = arith.subf %183, %185 : vector<1x128xf32>
      %cst_69 = arith.constant -2.08257341 : f32
      %187 = vector.broadcast %cst_69 : f32 to vector<1x128xf32>
      %188 = arith.mulf %187, %111 : vector<1x128xf32>
      %189 = arith.subf %186, %188 : vector<1x128xf32>
      %cst_70 = arith.constant 0.450445443 : f32
      %190 = vector.broadcast %cst_70 : f32 to vector<1x128xf32>
      %191 = arith.mulf %190, %84 : vector<1x128xf32>
      %192 = arith.subf %189, %191 : vector<1x128xf32>
      %193 = vector.extract_strided_slice %30 {offsets = [6, 0], sizes = [1, 128], strides = [1, 1]} : vector<8x128xf32> to vector<1x128xf32>
      %cst_71 = arith.constant 0.0564484634 : f32
      %194 = vector.broadcast %cst_71 : f32 to vector<1x128xf32>
      %195 = arith.mulf %194, %193 : vector<1x128xf32>
      %cst_72 = arith.constant 0.000000e+00 : f32
      %196 = vector.broadcast %cst_72 : f32 to vector<1x128xf32>
      %197 = arith.mulf %196, %166 : vector<1x128xf32>
      %198 = arith.addf %195, %197 : vector<1x128xf32>
      %cst_73 = arith.constant -0.112896927 : f32
      %199 = vector.broadcast %cst_73 : f32 to vector<1x128xf32>
      %200 = arith.mulf %199, %139 : vector<1x128xf32>
      %201 = arith.addf %198, %200 : vector<1x128xf32>
      %cst_74 = arith.constant 0.000000e+00 : f32
      %202 = vector.broadcast %cst_74 : f32 to vector<1x128xf32>
      %203 = arith.mulf %202, %112 : vector<1x128xf32>
      %204 = arith.addf %201, %203 : vector<1x128xf32>
      %cst_75 = arith.constant 0.0564484634 : f32
      %205 = vector.broadcast %cst_75 : f32 to vector<1x128xf32>
      %206 = arith.mulf %205, %85 : vector<1x128xf32>
      %207 = arith.addf %204, %206 : vector<1x128xf32>
      %cst_76 = arith.constant -3.15946341 : f32
      %208 = vector.broadcast %cst_76 : f32 to vector<1x128xf32>
      %209 = arith.mulf %208, %192 : vector<1x128xf32>
      %210 = arith.subf %207, %209 : vector<1x128xf32>
      %cst_77 = arith.constant 3.79268432 : f32
      %211 = vector.broadcast %cst_77 : f32 to vector<1x128xf32>
      %212 = arith.mulf %211, %165 : vector<1x128xf32>
      %213 = arith.subf %210, %212 : vector<1x128xf32>
      %cst_78 = arith.constant -2.08257341 : f32
      %214 = vector.broadcast %cst_78 : f32 to vector<1x128xf32>
      %215 = arith.mulf %214, %138 : vector<1x128xf32>
      %216 = arith.subf %213, %215 : vector<1x128xf32>
      %cst_79 = arith.constant 0.450445443 : f32
      %217 = vector.broadcast %cst_79 : f32 to vector<1x128xf32>
      %218 = arith.mulf %217, %111 : vector<1x128xf32>
      %219 = arith.subf %216, %218 : vector<1x128xf32>
      %220 = vector.extract_strided_slice %30 {offsets = [7, 0], sizes = [1, 128], strides = [1, 1]} : vector<8x128xf32> to vector<1x128xf32>
      %cst_80 = arith.constant 0.0564484634 : f32
      %221 = vector.broadcast %cst_80 : f32 to vector<1x128xf32>
      %222 = arith.mulf %221, %220 : vector<1x128xf32>
      %cst_81 = arith.constant 0.000000e+00 : f32
      %223 = vector.broadcast %cst_81 : f32 to vector<1x128xf32>
      %224 = arith.mulf %223, %193 : vector<1x128xf32>
      %225 = arith.addf %222, %224 : vector<1x128xf32>
      %cst_82 = arith.constant -0.112896927 : f32
      %226 = vector.broadcast %cst_82 : f32 to vector<1x128xf32>
      %227 = arith.mulf %226, %166 : vector<1x128xf32>
      %228 = arith.addf %225, %227 : vector<1x128xf32>
      %cst_83 = arith.constant 0.000000e+00 : f32
      %229 = vector.broadcast %cst_83 : f32 to vector<1x128xf32>
      %230 = arith.mulf %229, %139 : vector<1x128xf32>
      %231 = arith.addf %228, %230 : vector<1x128xf32>
      %cst_84 = arith.constant 0.0564484634 : f32
      %232 = vector.broadcast %cst_84 : f32 to vector<1x128xf32>
      %233 = arith.mulf %232, %112 : vector<1x128xf32>
      %234 = arith.addf %231, %233 : vector<1x128xf32>
      %cst_85 = arith.constant -3.15946341 : f32
      %235 = vector.broadcast %cst_85 : f32 to vector<1x128xf32>
      %236 = arith.mulf %235, %219 : vector<1x128xf32>
      %237 = arith.subf %234, %236 : vector<1x128xf32>
      %cst_86 = arith.constant 3.79268432 : f32
      %238 = vector.broadcast %cst_86 : f32 to vector<1x128xf32>
      %239 = arith.mulf %238, %192 : vector<1x128xf32>
      %240 = arith.subf %237, %239 : vector<1x128xf32>
      %cst_87 = arith.constant -2.08257341 : f32
      %241 = vector.broadcast %cst_87 : f32 to vector<1x128xf32>
      %242 = arith.mulf %241, %165 : vector<1x128xf32>
      %243 = arith.subf %240, %242 : vector<1x128xf32>
      %cst_88 = arith.constant 0.450445443 : f32
      %244 = vector.broadcast %cst_88 : f32 to vector<1x128xf32>
      %245 = arith.mulf %244, %138 : vector<1x128xf32>
      %246 = arith.subf %243, %245 : vector<1x128xf32>
      %247 = tpu.concatenate %57, %84, %111, %138, %165, %192, %219, %246 in 0 : vector<1x128xf32>, vector<1x128xf32>, vector<1x128xf32>, vector<1x128xf32>, vector<1x128xf32>, vector<1x128xf32>, vector<1x128xf32>, vector<1x128xf32> -> vector<8x128xf32>
      %248 = arith.index_cast %28 : i32 to index
      %c0_89 = arith.constant 0 : index
      %249 = vector.load %arg5[%248, %c0_89] : memref<256x128xf32, #tpu.memory_space<vmem>>, vector<8x128xf32>
      tpu.vector_store %arg5[%248, %c0_89], %247 {strides = array<i32>} : memref<256x128xf32, #tpu.memory_space<vmem>>, vector<8x128xf32>,
      scf.yield %220, %193, %166, %139, %246, %219, %192, %165 : vector<1x128xf32>, vector<1x128xf32>, vector<1x128xf32>, vector<1x128xf32>, vector<1x128xf32>, vector<1x128xf32>, vector<1x128xf32>, vector<1x128xf32>
    }
    %c32_i32_11 = arith.constant 32 : i32
    %c0_i32_12 = arith.constant 0 : i32
    %c32_i32_13 = arith.constant 32 : i32
    %25 = arith.addi %c0_i32_12, %c32_i32_13 : i32
    %c1_i32_14 = arith.constant 1 : i32
    %26:8 = scf.for %arg6 = %c0_i32_12 to %25 step %c1_i32_14 iter_args(%arg7 = %22, %arg8 = %22, %arg9 = %22, %arg10 = %22, %arg11 = %22, %arg12 = %22, %arg13 = %22, %arg14 = %22) -> (vector<1x128xf32>, vector<1x128xf32>, vector<1x128xf32>, vector<1x128xf32>, vector<1x128xf32>, vector<1x128xf32>, vector<1x128xf32>, vector<1x128xf32>)  : i32 {
      %c31_i32 = arith.constant 31 : i32
      %27 = arith.subi %c31_i32, %arg6 : i32
      %c8_i32 = arith.constant 8 : i32
      %28 = arith.muli %27, %c8_i32 : i32
      %29 = tpu.assume_multiple %28, 8 : i32
      %30 = arith.index_cast %29 : i32 to index
      %c0_16 = arith.constant 0 : index
      %31 = vector.load %arg5[%30, %c0_16] : memref<256x128xf32, #tpu.memory_space<vmem>>, vector<8x128xf32>
      %32 = vector.extract_strided_slice %31 {offsets = [7, 0], sizes = [1, 128], strides = [1, 1]} : vector<8x128xf32> to vector<1x128xf32>
      %cst_17 = arith.constant 0.0564484634 : f32
      %33 = vector.broadcast %cst_17 : f32 to vector<1x128xf32>
      %34 = arith.mulf %33, %32 : vector<1x128xf32>
      %cst_18 = arith.constant 0.000000e+00 : f32
      %35 = vector.broadcast %cst_18 : f32 to vector<1x128xf32>
      %36 = arith.mulf %35, %arg7 : vector<1x128xf32>
      %37 = arith.addf %34, %36 : vector<1x128xf32>
      %cst_19 = arith.constant -0.112896927 : f32
      %38 = vector.broadcast %cst_19 : f32 to vector<1x128xf32>
      %39 = arith.mulf %38, %arg8 : vector<1x128xf32>
      %40 = arith.addf %37, %39 : vector<1x128xf32>
      %cst_20 = arith.constant 0.000000e+00 : f32
      %41 = vector.broadcast %cst_20 : f32 to vector<1x128xf32>
      %42 = arith.mulf %41, %arg9 : vector<1x128xf32>
      %43 = arith.addf %40, %42 : vector<1x128xf32>
      %cst_21 = arith.constant 0.0564484634 : f32
      %44 = vector.broadcast %cst_21 : f32 to vector<1x128xf32>
      %45 = arith.mulf %44, %arg10 : vector<1x128xf32>
      %46 = arith.addf %43, %45 : vector<1x128xf32>
      %cst_22 = arith.constant -3.15946341 : f32
      %47 = vector.broadcast %cst_22 : f32 to vector<1x128xf32>
      %48 = arith.mulf %47, %arg11 : vector<1x128xf32>
      %49 = arith.subf %46, %48 : vector<1x128xf32>
      %cst_23 = arith.constant 3.79268432 : f32
      %50 = vector.broadcast %cst_23 : f32 to vector<1x128xf32>
      %51 = arith.mulf %50, %arg12 : vector<1x128xf32>
      %52 = arith.subf %49, %51 : vector<1x128xf32>
      %cst_24 = arith.constant -2.08257341 : f32
      %53 = vector.broadcast %cst_24 : f32 to vector<1x128xf32>
      %54 = arith.mulf %53, %arg13 : vector<1x128xf32>
      %55 = arith.subf %52, %54 : vector<1x128xf32>
      %cst_25 = arith.constant 0.450445443 : f32
      %56 = vector.broadcast %cst_25 : f32 to vector<1x128xf32>
      %57 = arith.mulf %56, %arg14 : vector<1x128xf32>
      %58 = arith.subf %55, %57 : vector<1x128xf32>
      %59 = vector.extract_strided_slice %31 {offsets = [6, 0], sizes = [1, 128], strides = [1, 1]} : vector<8x128xf32> to vector<1x128xf32>
      %cst_26 = arith.constant 0.0564484634 : f32
      %60 = vector.broadcast %cst_26 : f32 to vector<1x128xf32>
      %61 = arith.mulf %60, %59 : vector<1x128xf32>
      %cst_27 = arith.constant 0.000000e+00 : f32
      %62 = vector.broadcast %cst_27 : f32 to vector<1x128xf32>
      %63 = arith.mulf %62, %32 : vector<1x128xf32>
      %64 = arith.addf %61, %63 : vector<1x128xf32>
      %cst_28 = arith.constant -0.112896927 : f32
      %65 = vector.broadcast %cst_28 : f32 to vector<1x128xf32>
      %66 = arith.mulf %65, %arg7 : vector<1x128xf32>
      %67 = arith.addf %64, %66 : vector<1x128xf32>
      %cst_29 = arith.constant 0.000000e+00 : f32
      %68 = vector.broadcast %cst_29 : f32 to vector<1x128xf32>
      %69 = arith.mulf %68, %arg8 : vector<1x128xf32>
      %70 = arith.addf %67, %69 : vector<1x128xf32>
      %cst_30 = arith.constant 0.0564484634 : f32
      %71 = vector.broadcast %cst_30 : f32 to vector<1x128xf32>
      %72 = arith.mulf %71, %arg9 : vector<1x128xf32>
      %73 = arith.addf %70, %72 : vector<1x128xf32>
      %cst_31 = arith.constant -3.15946341 : f32
      %74 = vector.broadcast %cst_31 : f32 to vector<1x128xf32>
      %75 = arith.mulf %74, %58 : vector<1x128xf32>
      %76 = arith.subf %73, %75 : vector<1x128xf32>
      %cst_32 = arith.constant 3.79268432 : f32
      %77 = vector.broadcast %cst_32 : f32 to vector<1x128xf32>
      %78 = arith.mulf %77, %arg11 : vector<1x128xf32>
      %79 = arith.subf %76, %78 : vector<1x128xf32>
      %cst_33 = arith.constant -2.08257341 : f32
      %80 = vector.broadcast %cst_33 : f32 to vector<1x128xf32>
      %81 = arith.mulf %80, %arg12 : vector<1x128xf32>
      %82 = arith.subf %79, %81 : vector<1x128xf32>
      %cst_34 = arith.constant 0.450445443 : f32
      %83 = vector.broadcast %cst_34 : f32 to vector<1x128xf32>
      %84 = arith.mulf %83, %arg13 : vector<1x128xf32>
      %85 = arith.subf %82, %84 : vector<1x128xf32>
      %86 = vector.extract_strided_slice %31 {offsets = [5, 0], sizes = [1, 128], strides = [1, 1]} : vector<8x128xf32> to vector<1x128xf32>
      %cst_35 = arith.constant 0.0564484634 : f32
      %87 = vector.broadcast %cst_35 : f32 to vector<1x128xf32>
      %88 = arith.mulf %87, %86 : vector<1x128xf32>
      %cst_36 = arith.constant 0.000000e+00 : f32
      %89 = vector.broadcast %cst_36 : f32 to vector<1x128xf32>
      %90 = arith.mulf %89, %59 : vector<1x128xf32>
      %91 = arith.addf %88, %90 : vector<1x128xf32>
      %cst_37 = arith.constant -0.112896927 : f32
      %92 = vector.broadcast %cst_37 : f32 to vector<1x128xf32>
      %93 = arith.mulf %92, %32 : vector<1x128xf32>
      %94 = arith.addf %91, %93 : vector<1x128xf32>
      %cst_38 = arith.constant 0.000000e+00 : f32
      %95 = vector.broadcast %cst_38 : f32 to vector<1x128xf32>
      %96 = arith.mulf %95, %arg7 : vector<1x128xf32>
      %97 = arith.addf %94, %96 : vector<1x128xf32>
      %cst_39 = arith.constant 0.0564484634 : f32
      %98 = vector.broadcast %cst_39 : f32 to vector<1x128xf32>
      %99 = arith.mulf %98, %arg8 : vector<1x128xf32>
      %100 = arith.addf %97, %99 : vector<1x128xf32>
      %cst_40 = arith.constant -3.15946341 : f32
      %101 = vector.broadcast %cst_40 : f32 to vector<1x128xf32>
      %102 = arith.mulf %101, %85 : vector<1x128xf32>
      %103 = arith.subf %100, %102 : vector<1x128xf32>
      %cst_41 = arith.constant 3.79268432 : f32
      %104 = vector.broadcast %cst_41 : f32 to vector<1x128xf32>
      %105 = arith.mulf %104, %58 : vector<1x128xf32>
      %106 = arith.subf %103, %105 : vector<1x128xf32>
      %cst_42 = arith.constant -2.08257341 : f32
      %107 = vector.broadcast %cst_42 : f32 to vector<1x128xf32>
      %108 = arith.mulf %107, %arg11 : vector<1x128xf32>
      %109 = arith.subf %106, %108 : vector<1x128xf32>
      %cst_43 = arith.constant 0.450445443 : f32
      %110 = vector.broadcast %cst_43 : f32 to vector<1x128xf32>
      %111 = arith.mulf %110, %arg12 : vector<1x128xf32>
      %112 = arith.subf %109, %111 : vector<1x128xf32>
      %113 = vector.extract_strided_slice %31 {offsets = [4, 0], sizes = [1, 128], strides = [1, 1]} : vector<8x128xf32> to vector<1x128xf32>
      %cst_44 = arith.constant 0.0564484634 : f32
      %114 = vector.broadcast %cst_44 : f32 to vector<1x128xf32>
      %115 = arith.mulf %114, %113 : vector<1x128xf32>
      %cst_45 = arith.constant 0.000000e+00 : f32
      %116 = vector.broadcast %cst_45 : f32 to vector<1x128xf32>
      %117 = arith.mulf %116, %86 : vector<1x128xf32>
      %118 = arith.addf %115, %117 : vector<1x128xf32>
      %cst_46 = arith.constant -0.112896927 : f32
      %119 = vector.broadcast %cst_46 : f32 to vector<1x128xf32>
      %120 = arith.mulf %119, %59 : vector<1x128xf32>
      %121 = arith.addf %118, %120 : vector<1x128xf32>
      %cst_47 = arith.constant 0.000000e+00 : f32
      %122 = vector.broadcast %cst_47 : f32 to vector<1x128xf32>
      %123 = arith.mulf %122, %32 : vector<1x128xf32>
      %124 = arith.addf %121, %123 : vector<1x128xf32>
      %cst_48 = arith.constant 0.0564484634 : f32
      %125 = vector.broadcast %cst_48 : f32 to vector<1x128xf32>
      %126 = arith.mulf %125, %arg7 : vector<1x128xf32>
      %127 = arith.addf %124, %126 : vector<1x128xf32>
      %cst_49 = arith.constant -3.15946341 : f32
      %128 = vector.broadcast %cst_49 : f32 to vector<1x128xf32>
      %129 = arith.mulf %128, %112 : vector<1x128xf32>
      %130 = arith.subf %127, %129 : vector<1x128xf32>
      %cst_50 = arith.constant 3.79268432 : f32
      %131 = vector.broadcast %cst_50 : f32 to vector<1x128xf32>
      %132 = arith.mulf %131, %85 : vector<1x128xf32>
      %133 = arith.subf %130, %132 : vector<1x128xf32>
      %cst_51 = arith.constant -2.08257341 : f32
      %134 = vector.broadcast %cst_51 : f32 to vector<1x128xf32>
      %135 = arith.mulf %134, %58 : vector<1x128xf32>
      %136 = arith.subf %133, %135 : vector<1x128xf32>
      %cst_52 = arith.constant 0.450445443 : f32
      %137 = vector.broadcast %cst_52 : f32 to vector<1x128xf32>
      %138 = arith.mulf %137, %arg11 : vector<1x128xf32>
      %139 = arith.subf %136, %138 : vector<1x128xf32>
      %140 = vector.extract_strided_slice %31 {offsets = [3, 0], sizes = [1, 128], strides = [1, 1]} : vector<8x128xf32> to vector<1x128xf32>
      %cst_53 = arith.constant 0.0564484634 : f32
      %141 = vector.broadcast %cst_53 : f32 to vector<1x128xf32>
      %142 = arith.mulf %141, %140 : vector<1x128xf32>
      %cst_54 = arith.constant 0.000000e+00 : f32
      %143 = vector.broadcast %cst_54 : f32 to vector<1x128xf32>
      %144 = arith.mulf %143, %113 : vector<1x128xf32>
      %145 = arith.addf %142, %144 : vector<1x128xf32>
      %cst_55 = arith.constant -0.112896927 : f32
      %146 = vector.broadcast %cst_55 : f32 to vector<1x128xf32>
      %147 = arith.mulf %146, %86 : vector<1x128xf32>
      %148 = arith.addf %145, %147 : vector<1x128xf32>
      %cst_56 = arith.constant 0.000000e+00 : f32
      %149 = vector.broadcast %cst_56 : f32 to vector<1x128xf32>
      %150 = arith.mulf %149, %59 : vector<1x128xf32>
      %151 = arith.addf %148, %150 : vector<1x128xf32>
      %cst_57 = arith.constant 0.0564484634 : f32
      %152 = vector.broadcast %cst_57 : f32 to vector<1x128xf32>
      %153 = arith.mulf %152, %32 : vector<1x128xf32>
      %154 = arith.addf %151, %153 : vector<1x128xf32>
      %cst_58 = arith.constant -3.15946341 : f32
      %155 = vector.broadcast %cst_58 : f32 to vector<1x128xf32>
      %156 = arith.mulf %155, %139 : vector<1x128xf32>
      %157 = arith.subf %154, %156 : vector<1x128xf32>
      %cst_59 = arith.constant 3.79268432 : f32
      %158 = vector.broadcast %cst_59 : f32 to vector<1x128xf32>
      %159 = arith.mulf %158, %112 : vector<1x128xf32>
      %160 = arith.subf %157, %159 : vector<1x128xf32>
      %cst_60 = arith.constant -2.08257341 : f32
      %161 = vector.broadcast %cst_60 : f32 to vector<1x128xf32>
      %162 = arith.mulf %161, %85 : vector<1x128xf32>
      %163 = arith.subf %160, %162 : vector<1x128xf32>
      %cst_61 = arith.constant 0.450445443 : f32
      %164 = vector.broadcast %cst_61 : f32 to vector<1x128xf32>
      %165 = arith.mulf %164, %58 : vector<1x128xf32>
      %166 = arith.subf %163, %165 : vector<1x128xf32>
      %167 = vector.extract_strided_slice %31 {offsets = [2, 0], sizes = [1, 128], strides = [1, 1]} : vector<8x128xf32> to vector<1x128xf32>
      %cst_62 = arith.constant 0.0564484634 : f32
      %168 = vector.broadcast %cst_62 : f32 to vector<1x128xf32>
      %169 = arith.mulf %168, %167 : vector<1x128xf32>
      %cst_63 = arith.constant 0.000000e+00 : f32
      %170 = vector.broadcast %cst_63 : f32 to vector<1x128xf32>
      %171 = arith.mulf %170, %140 : vector<1x128xf32>
      %172 = arith.addf %169, %171 : vector<1x128xf32>
      %cst_64 = arith.constant -0.112896927 : f32
      %173 = vector.broadcast %cst_64 : f32 to vector<1x128xf32>
      %174 = arith.mulf %173, %113 : vector<1x128xf32>
      %175 = arith.addf %172, %174 : vector<1x128xf32>
      %cst_65 = arith.constant 0.000000e+00 : f32
      %176 = vector.broadcast %cst_65 : f32 to vector<1x128xf32>
      %177 = arith.mulf %176, %86 : vector<1x128xf32>
      %178 = arith.addf %175, %177 : vector<1x128xf32>
      %cst_66 = arith.constant 0.0564484634 : f32
      %179 = vector.broadcast %cst_66 : f32 to vector<1x128xf32>
      %180 = arith.mulf %179, %59 : vector<1x128xf32>
      %181 = arith.addf %178, %180 : vector<1x128xf32>
      %cst_67 = arith.constant -3.15946341 : f32
      %182 = vector.broadcast %cst_67 : f32 to vector<1x128xf32>
      %183 = arith.mulf %182, %166 : vector<1x128xf32>
      %184 = arith.subf %181, %183 : vector<1x128xf32>
      %cst_68 = arith.constant 3.79268432 : f32
      %185 = vector.broadcast %cst_68 : f32 to vector<1x128xf32>
      %186 = arith.mulf %185, %139 : vector<1x128xf32>
      %187 = arith.subf %184, %186 : vector<1x128xf32>
      %cst_69 = arith.constant -2.08257341 : f32
      %188 = vector.broadcast %cst_69 : f32 to vector<1x128xf32>
      %189 = arith.mulf %188, %112 : vector<1x128xf32>
      %190 = arith.subf %187, %189 : vector<1x128xf32>
      %cst_70 = arith.constant 0.450445443 : f32
      %191 = vector.broadcast %cst_70 : f32 to vector<1x128xf32>
      %192 = arith.mulf %191, %85 : vector<1x128xf32>
      %193 = arith.subf %190, %192 : vector<1x128xf32>
      %194 = vector.extract_strided_slice %31 {offsets = [1, 0], sizes = [1, 128], strides = [1, 1]} : vector<8x128xf32> to vector<1x128xf32>
      %cst_71 = arith.constant 0.0564484634 : f32
      %195 = vector.broadcast %cst_71 : f32 to vector<1x128xf32>
      %196 = arith.mulf %195, %194 : vector<1x128xf32>
      %cst_72 = arith.constant 0.000000e+00 : f32
      %197 = vector.broadcast %cst_72 : f32 to vector<1x128xf32>
      %198 = arith.mulf %197, %167 : vector<1x128xf32>
      %199 = arith.addf %196, %198 : vector<1x128xf32>
      %cst_73 = arith.constant -0.112896927 : f32
      %200 = vector.broadcast %cst_73 : f32 to vector<1x128xf32>
      %201 = arith.mulf %200, %140 : vector<1x128xf32>
      %202 = arith.addf %199, %201 : vector<1x128xf32>
      %cst_74 = arith.constant 0.000000e+00 : f32
      %203 = vector.broadcast %cst_74 : f32 to vector<1x128xf32>
      %204 = arith.mulf %203, %113 : vector<1x128xf32>
      %205 = arith.addf %202, %204 : vector<1x128xf32>
      %cst_75 = arith.constant 0.0564484634 : f32
      %206 = vector.broadcast %cst_75 : f32 to vector<1x128xf32>
      %207 = arith.mulf %206, %86 : vector<1x128xf32>
      %208 = arith.addf %205, %207 : vector<1x128xf32>
      %cst_76 = arith.constant -3.15946341 : f32
      %209 = vector.broadcast %cst_76 : f32 to vector<1x128xf32>
      %210 = arith.mulf %209, %193 : vector<1x128xf32>
      %211 = arith.subf %208, %210 : vector<1x128xf32>
      %cst_77 = arith.constant 3.79268432 : f32
      %212 = vector.broadcast %cst_77 : f32 to vector<1x128xf32>
      %213 = arith.mulf %212, %166 : vector<1x128xf32>
      %214 = arith.subf %211, %213 : vector<1x128xf32>
      %cst_78 = arith.constant -2.08257341 : f32
      %215 = vector.broadcast %cst_78 : f32 to vector<1x128xf32>
      %216 = arith.mulf %215, %139 : vector<1x128xf32>
      %217 = arith.subf %214, %216 : vector<1x128xf32>
      %cst_79 = arith.constant 0.450445443 : f32
      %218 = vector.broadcast %cst_79 : f32 to vector<1x128xf32>
      %219 = arith.mulf %218, %112 : vector<1x128xf32>
      %220 = arith.subf %217, %219 : vector<1x128xf32>
      %221 = vector.extract_strided_slice %31 {offsets = [0, 0], sizes = [1, 128], strides = [1, 1]} : vector<8x128xf32> to vector<1x128xf32>
      %cst_80 = arith.constant 0.0564484634 : f32
      %222 = vector.broadcast %cst_80 : f32 to vector<1x128xf32>
      %223 = arith.mulf %222, %221 : vector<1x128xf32>
      %cst_81 = arith.constant 0.000000e+00 : f32
      %224 = vector.broadcast %cst_81 : f32 to vector<1x128xf32>
      %225 = arith.mulf %224, %194 : vector<1x128xf32>
      %226 = arith.addf %223, %225 : vector<1x128xf32>
      %cst_82 = arith.constant -0.112896927 : f32
      %227 = vector.broadcast %cst_82 : f32 to vector<1x128xf32>
      %228 = arith.mulf %227, %167 : vector<1x128xf32>
      %229 = arith.addf %226, %228 : vector<1x128xf32>
      %cst_83 = arith.constant 0.000000e+00 : f32
      %230 = vector.broadcast %cst_83 : f32 to vector<1x128xf32>
      %231 = arith.mulf %230, %140 : vector<1x128xf32>
      %232 = arith.addf %229, %231 : vector<1x128xf32>
      %cst_84 = arith.constant 0.0564484634 : f32
      %233 = vector.broadcast %cst_84 : f32 to vector<1x128xf32>
      %234 = arith.mulf %233, %113 : vector<1x128xf32>
      %235 = arith.addf %232, %234 : vector<1x128xf32>
      %cst_85 = arith.constant -3.15946341 : f32
      %236 = vector.broadcast %cst_85 : f32 to vector<1x128xf32>
      %237 = arith.mulf %236, %220 : vector<1x128xf32>
      %238 = arith.subf %235, %237 : vector<1x128xf32>
      %cst_86 = arith.constant 3.79268432 : f32
      %239 = vector.broadcast %cst_86 : f32 to vector<1x128xf32>
      %240 = arith.mulf %239, %193 : vector<1x128xf32>
      %241 = arith.subf %238, %240 : vector<1x128xf32>
      %cst_87 = arith.constant -2.08257341 : f32
      %242 = vector.broadcast %cst_87 : f32 to vector<1x128xf32>
      %243 = arith.mulf %242, %166 : vector<1x128xf32>
      %244 = arith.subf %241, %243 : vector<1x128xf32>
      %cst_88 = arith.constant 0.450445443 : f32
      %245 = vector.broadcast %cst_88 : f32 to vector<1x128xf32>
      %246 = arith.mulf %245, %139 : vector<1x128xf32>
      %247 = arith.subf %244, %246 : vector<1x128xf32>
      %248 = tpu.concatenate %247, %220, %193, %166, %139, %112, %85, %58 in 0 : vector<1x128xf32>, vector<1x128xf32>, vector<1x128xf32>, vector<1x128xf32>, vector<1x128xf32>, vector<1x128xf32>, vector<1x128xf32>, vector<1x128xf32> -> vector<8x128xf32>
      %249 = vector.broadcast %13 : vector<1x128xf32> to vector<8x128xf32>
      %250 = arith.mulf %248, %249 : vector<8x128xf32>
      %251 = arith.index_cast %29 : i32 to index
      %c0_89 = arith.constant 0 : index
      %252 = vector.load %arg3[%251, %c0_89] : memref<256x128xf32, #tpu.memory_space<vmem>>, vector<8x128xf32>
      tpu.vector_store %arg3[%251, %c0_89], %250 {strides = array<i32>} : memref<256x128xf32, #tpu.memory_space<vmem>>, vector<8x128xf32>,
      scf.yield %221, %194, %167, %140, %247, %220, %193, %166 : vector<1x128xf32>, vector<1x128xf32>, vector<1x128xf32>, vector<1x128xf32>, vector<1x128xf32>, vector<1x128xf32>, vector<1x128xf32>, vector<1x128xf32>
    }
    %c32_i32_15 = arith.constant 32 : i32
    return
  }
  func.func @transform_0(%arg0: i32) -> (i32, i32) {
    %c0_i32 = arith.constant 0 : i32
    %c0_i32_0 = arith.constant 0 : i32
    return %c0_i32, %arg0 : i32, i32
  }
  func.func @transform_1(%arg0: i32) -> (i32, i32) {
    %c0_i32 = arith.constant 0 : i32
    %c0_i32_0 = arith.constant 0 : i32
    %c0_i32_1 = arith.constant 0 : i32
    return %c0_i32, %c0_i32_0 : i32, i32
  }
  func.func @transform_2(%arg0: i32) -> (i32, i32) {
    %c0_i32 = arith.constant 0 : i32
    %c0_i32_0 = arith.constant 0 : i32
    return %c0_i32, %arg0 : i32, i32
  }
}

</mosaic_0001>

<bundles_post_ra>
// kernel: tpu_custom_call.1
= control target key start
LH: loop header
LB: loop body
LE: loop exit
PB: predicated region body
PF: predicated region fallthrough
CT: control target
= control target key end

     0   :  { %v1259_v3 = vmov 0   ;;  %s1932_s0 = inlined_call_operand.vmem [shape: f32[256,128], index: 0, kind: input, shape index: {}]   ;;  %s1933_s1 = inlined_call_operand.vmem [shape: f32[256,1], index: 1, kind: input, shape index: {}]   ;;  %s1934_s2 = inlined_call_operand.hbm [shape: f32[256,128], index: 2, kind: output, shape index: {}]  }
   0x1   :  { %v243_v0 = vld [vmem:[%s1933_s1 + $0x20] sm:$0xff]  ;;  %v241_v1 = vld [vmem:[%s1933_s1 + $0x10] sm:$0xff]  ;;  %1132 = vset.pattern.permute.xlu2 %v1259_v3  ;;  %1131 = vset.pattern.permute.xlu1 %v1259_v3  ;;  %v1296_v5 = vld [vmem:[%s1932_s0 + $0x8] sm:$0xff] }
   0x2   :  { %v239_v2 = vld [vmem:[%s1933_s1] sm:$0xff]  ;;  %1130 = vset.pattern.permute.xlu0 %v1259_v3  ;;  %293 = vperm.xlu2 %1132, %v243_v0   ;;  %v1301_v6 = vld [vmem:[%s1932_s0 + $0x10] sm:$0xff]  ;;  %v244_v8 = vld [vmem:[%s1933_s1 + $0x28] sm:$0xff] }
   0x3   :  { %283 = vperm.xlu1 %1131, %v241_v1   ;;  %273 = vperm.xlu0 %1130, %v239_v2   ;;  %v1291_v4 = vld [vmem:[%s1932_s0] sm:$0xff]  ;;  %v1311_v9 = vld [vmem:[%s1932_s0 + $0x18] sm:$0xff]  ;;  %v240_v11 = vld [vmem:[%s1933_s1 + $0x8] sm:$0xff] }
   0x4   :  { %v44_v7 = vadd.f32 %v1296_v5, %v1291_v4  ;;  %v242_v10 = vld [vmem:[%s1933_s1 + $0x18] sm:$0xff]  ;;  %v1323_v13 = vld [vmem:[%s1932_s0 + $0x20] sm:$0xff]  ;;  %v1329_v15 = vld [vmem:[%s1932_s0 + $0x28] sm:$0xff] }
   0x5   :  { %v1335_v17 = vld [vmem:[%s1932_s0 + $0x30] sm:$0xff] }
   0x6   :  { %v45_v12 = vadd.f32 %v44_v7, %v1301_v6 }
   0x8   :  { %v46_v14 = vadd.f32 %v45_v12, %v1311_v9 }
   0xa   :  { %298 = vperm.xlu2 %1132, %v244_v8   ;;  %v47_v16 = vadd.f32 %v46_v14, %v1323_v13 }
   0xb   :  { %288 = vperm.xlu1 %1131, %v242_v10   ;;  %278 = vperm.xlu0 %1130, %v240_v11  }
   0xc   :  { %7 = vsyncpa [#allocation5], 0  ;;  %v48_v18 = vadd.f32 %v47_v16, %v1329_v15  ;;  %v247_v19 = vld [vmem:[%s1933_s1 + $0x40] sm:$0xff]  ;;  %v1344_v20 = vld [vmem:[%s1932_s0 + $0x38] sm:$0xff]  ;;  %v1260_v14 = vmov 256.0  }
   0xd   :  { %v246_v21 = vld [vmem:[%s1933_s1 + $0x38] sm:$0xff]  ;;  %v245_v22 = vld [vmem:[%s1933_s1 + $0x30] sm:$0xff]  ;;  %v1356_v24 = vld [vmem:[%s1932_s0 + $0x40] sm:$0xff]  ;;  %1133 = vrcp.f32 %v1260_v14 }
   0xe   :  { %v49_v23 = vadd.f32 %v48_v18, %v1335_v17  ;;  %v1362_v26 = vld [vmem:[%s1932_s0 + $0x48] sm:$0xff]  ;;  %v1368_v28 = vld [vmem:[%s1932_s0 + $0x50] sm:$0xff]  ;;  %v250_v30 = vld [vmem:[%s1933_s1 + $0x58] sm:$0xff] }
   0xf   :  { %v1377_v31 = vld [vmem:[%s1932_s0 + $0x58] sm:$0xff]  ;;  %v249_v32 = vld [vmem:[%s1933_s1 + $0x50] sm:$0xff]  ;;  %v248_v33 = vld [vmem:[%s1933_s1 + $0x48] sm:$0xff] }
  0x10   :  { %v50_v25 = vadd.f32 %v49_v23, %v1344_v20  ;;  %v1389_v35 = vld [vmem:[%s1932_s0 + $0x60] sm:$0xff]  ;;  %v1395_v37 = vld [vmem:[%s1932_s0 + $0x68] sm:$0xff]  ;;  %v1401_v39 = vld [vmem:[%s1932_s0 + $0x70] sm:$0xff] }
  0x11   :  { %v253_v41 = vld [vmem:[%s1933_s1 + $0x70] sm:$0xff]  ;;  %v1410_v42 = vld [vmem:[%s1932_s0 + $0x78] sm:$0xff]  ;;  %v252_v43 = vld [vmem:[%s1933_s1 + $0x68] sm:$0xff] }
  0x12   :  { %313 = vperm.xlu2 %1132, %v247_v19   ;;  %v51_v27 = vadd.f32 %v50_v25, %v1356_v24  ;;  %v251_v44 = vld [vmem:[%s1933_s1 + $0x60] sm:$0xff]  ;;  %v1428_v48 = vld [vmem:[%s1932_s0 + $0x88] sm:$0xff]  ;;  %v1434_v50 = vld [vmem:[%s1932_s0 + $0x90] sm:$0xff] }
  0x13   :  { %308 = vperm.xlu1 %1131, %v246_v21   ;;  %303 = vperm.xlu0 %1130, %v245_v22   ;;  %v1422_v46 = vld [vmem:[%s1932_s0 + $0x80] sm:$0xff]  ;;  %v256_v52 = vld [vmem:[%s1933_s1 + $0x88] sm:$0xff]  ;;  %v1443_v53 = vld [vmem:[%s1932_s0 + $0x98] sm:$0xff] }
  0x14   :  { %v52_v29 = vadd.f32 %v51_v27, %v1362_v26  ;;  %v255_v54 = vld [vmem:[%s1933_s1 + $0x80] sm:$0xff]  ;;  %v254_v55 = vld [vmem:[%s1933_s1 + $0x78] sm:$0xff]  ;;  %v1461_v59 = vld [vmem:[%s1932_s0 + $0xa8] sm:$0xff] }
  0x15   :  { %v1455_v57 = vld [vmem:[%s1932_s0 + $0xa0] sm:$0xff]  ;;  %v1467_v61 = vld [vmem:[%s1932_s0 + $0xb0] sm:$0xff]  ;;  %v1476_v0 = vld [vmem:[%s1932_s0 + $0xb8] sm:$0xff] }
  0x16   :  { %v53_v34 = vadd.f32 %v52_v29, %v1368_v28  ;;  %v259_v63 = vld [vmem:[%s1933_s1 + $0xa0] sm:$0xff]  ;;  %v258_v1 = vld [vmem:[%s1933_s1 + $0x98] sm:$0xff]  ;;  %v257_v2 = vld [vmem:[%s1933_s1 + $0x90] sm:$0xff]  ;;  %v1134_v29 = vpop.eup %1133 }
  0x17   :  { %v1488_v7 = vld [vmem:[%s1932_s0 + $0xc0] sm:$0xff]  ;;  %v1494_v10 = vld [vmem:[%s1932_s0 + $0xc8] sm:$0xff]  ;;  %v1500_v12 = vld [vmem:[%s1932_s0 + $0xd0] sm:$0xff]  ;;  %vm86_vm0 = vweird.f32 %v1134_v29 }
  0x18   :  { %v54_v36 = vadd.f32 %v53_v34, %v1377_v31  ;;  %v262_v18 = vld [vmem:[%s1933_s1 + $0xb8] sm:$0xff]  ;;  %v261_v21 = vld [vmem:[%s1933_s1 + $0xb0] sm:$0xff]  ;;  %v260_v22 = vld [vmem:[%s1933_s1 + $0xa8] sm:$0xff] }
  0x19   :  { %v1509_v19 = vld [vmem:[%s1932_s0 + $0xd8] sm:$0xff]  ;;  %v1521_v25 = vld [vmem:[%s1932_s0 + $0xe0] sm:$0xff] }
  0x1a   :  { %328 = vperm.xlu2 %1132, %v250_v30   ;;  %v55_v38 = vadd.f32 %v54_v36, %v1389_v35  ;;  %v1527_v30 = vld [vmem:[%s1932_s0 + $0xe8] sm:$0xff]  ;;  %v82_v36 = vmul.f32 256.0, %v1134_v29 }
  0x1b   :  { %323 = vperm.xlu1 %1131, %v249_v32   ;;  %318 = vperm.xlu0 %1130, %v248_v33   ;;  %v1533_v33 = vld [vmem:[%s1932_s0 + $0xf0] sm:$0xff] }
  0x1c   :  { %v56_v40 = vadd.f32 %v55_v38, %v1395_v37  ;;  %v265_v38 = vld [vmem:[%s1933_s1 + $0xd0] sm:$0xff] }
  0x1e   :  { %v57_v45 = vadd.f32 %v56_v40, %v1401_v39  ;;  %v1542_v40 = vld [vmem:[%s1932_s0 + $0xf8] sm:$0xff] }
  0x20   :  { %v58_v47 = vadd.f32 %v57_v45, %v1410_v42 }
  0x22   :  { %343 = vperm.xlu2 %1132, %v253_v41   ;;  %v59_v49 = vadd.f32 %v58_v47, %v1422_v46  ;;  %v264_v41 = vld [vmem:[%s1933_s1 + $0xc8] sm:$0xff]  ;;  %v83_v47 = vsub.f32 1.0, %v82_v36 }
  0x23   :  { %338 = vperm.xlu1 %1131, %v252_v43   ;;  %333 = vperm.xlu0 %1130, %v251_v44   ;;  %v263_v43 = vld [vmem:[%s1933_s1 + $0xc0] sm:$0xff] }
  0x24   :  { %v60_v51 = vadd.f32 %v59_v49, %v1428_v48 }
  0x26   :  { %v61_v56 = vadd.f32 %v60_v51, %v1434_v50 }
  0x28   :  { %v62_v58 = vadd.f32 %v61_v56, %v1443_v53  ;;  %v266_v56 = vld [vmem:[%s1933_s1 + $0xd8] sm:$0xff] }
  0x2a   :  { %358 = vperm.xlu2 %1132, %v256_v52   ;;  %v63_v60 = vadd.f32 %v62_v58, %v1455_v57  ;;  %v84_v52 = vmul.f32 %v1134_v29, %v83_v47 }
  0x2b   :  { %353 = vperm.xlu1 %1131, %v255_v54   ;;  %348 = vperm.xlu0 %1130, %v254_v55   ;;  %v268_v54 = vld [vmem:[%s1933_s1 + $0xe8] sm:$0xff]  ;;  %v267_v55 = vld [vmem:[%s1933_s1 + $0xe0] sm:$0xff] }
  0x2c   :  { %v64_v62 = vadd.f32 %v63_v60, %v1461_v59 }
  0x2e   :  { %v65_v3 = vadd.f32 %v64_v62, %v1467_v61  ;;  %v85_v62 = vadd.f32 %v1134_v29, %v84_v52 }
  0x30   :  { %v66_v8 = vadd.f32 %v65_v3, %v1476_v0  ;;  %v270_v3 = vld [vmem:[%s1933_s1 + $0xf8] sm:$0xff] }
  0x32   :  { %373 = vperm.xlu2 %1132, %v259_v63   ;;  %v67_v11 = vadd.f32 %v66_v8, %v1488_v7  ;;  %v269_v8 = vld [vmem:[%s1933_s1 + $0xf0] sm:$0xff]  ;;  %s1793_s1 = smov 0  }
  0x33   :  { %368 = vperm.xlu1 %1131, %v258_v1   ;;  %363 = vperm.xlu0 %1130, %v257_v2   ;;  %v87_v2 = vsel %vm86_vm0, %v1134_v29, %v85_v62 }
  0x34   :  { %v68_v16 = vadd.f32 %v67_v11, %v1494_v10 }
  0x36   :  { %v69_v23 = vadd.f32 %v68_v16, %v1500_v12 }
  0x38   :  { %v70_v27 = vadd.f32 %v69_v23, %v1509_v19 }
  0x3a   :  { %388 = vperm.xlu2 %1132, %v262_v18   ;;  %v71_v32 = vadd.f32 %v70_v27, %v1521_v25 }
  0x3b   :  { %383 = vperm.xlu1 %1131, %v261_v21   ;;  %378 = vperm.xlu0 %1130, %v260_v22  }
  0x3c   :  { %v72_v34 = vadd.f32 %v71_v32, %v1527_v30 }
  0x3e   :  { %v73_v44 = vadd.f32 %v72_v34, %v1533_v33 }
  0x40   :  { %v74_v45 = vadd.f32 %v73_v44, %v1542_v40 }
  0x42   :  { %403 = vperm.xlu2 %1132, %v265_v38   ;;  %v75_v49 = vrot.slane %v74_v45, 4 }
  0x43   :  { %398 = vperm.xlu1 %1131, %v264_v41   ;;  %393 = vperm.xlu0 %1130, %v263_v43  }
  0x44   :  { %v76_v51 = vadd.f32 %v75_v49, %v74_v45 }
  0x46   :  { %v77_v58 = vrot.slane %v76_v51, 2 }
  0x48   :  { %v78_v60 = vadd.f32 %v77_v58, %v76_v51 }
  0x4a   :  { %418 = vperm.xlu2 %1132, %v268_v54   ;;  %v79_v63 = vrot.slane %v78_v60, 1 }
  0x4b   :  { %413 = vperm.xlu1 %1131, %v267_v55   ;;  %408 = vperm.xlu0 %1130, %v266_v56  }
  0x4c   :  { %v80_v1 = vadd.f32 %v79_v63, %v78_v60 }
  0x4e   :  { %v88_v11 = vmul.f32 %v87_v2, %v80_v1 }
  0x50   :  { %v1568_v14 = vsub.f32 %v1291_v4, %v88_v11  ;;  %v1571_v16 = vsub.f32 %v1296_v5, %v88_v11  ;;  %v1574_v18 = vsub.f32 %v1301_v6, %v88_v11  ;;  %v1577_v21 = vsub.f32 %v1311_v9, %v88_v11 }
  0x51   :  { %v1580_v22 = vsub.f32 %v1323_v13, %v88_v11  ;;  %v1583_v23 = vsub.f32 %v1329_v15, %v88_v11  ;;  %v1586_v27 = vsub.f32 %v1335_v17, %v88_v11  ;;  %v1589_v4 = vsub.f32 %v1344_v20, %v88_v11 }
  0x52   :  { %v1592_v5 = vsub.f32 %v1356_v24, %v88_v11  ;;  %v1595_v6 = vsub.f32 %v1362_v26, %v88_v11  ;;  %v1598_v9 = vsub.f32 %v1368_v28, %v88_v11  ;;  %v1601_v13 = vsub.f32 %v1377_v31, %v88_v11 }
  0x53   :  { %428 = vperm.xlu1 %1131, %v270_v3   ;;  %423 = vperm.xlu0 %1130, %v269_v8   ;;  %v1604_v15 = vsub.f32 %v1389_v35, %v88_v11  ;;  %v1607_v17 = vsub.f32 %v1395_v37, %v88_v11  ;;  %v1610_v20 = vsub.f32 %v1401_v39, %v88_v11  ;;  %v121_v37 = vand.u32 2147483647, %v1568_v14 }
  0x54   :  { %v1613_v24 = vsub.f32 %v1410_v42, %v88_v11  ;;  %v1616_v26 = vsub.f32 %v1422_v46, %v88_v11  ;;  %v1619_v28 = vsub.f32 %v1428_v48, %v88_v11  ;;  %v1622_v31 = vsub.f32 %v1434_v50, %v88_v11 }
  0x55   :  { %v1625_v35 = vsub.f32 %v1443_v53, %v88_v11  ;;  %v122_v39 = vand.u32 2147483647, %v1571_v16  ;;  %v1630_v29 = vsub.f32 %v1455_v57, %v88_v11  ;;  %v123_v42 = vand.u32 2147483647, %v1574_v18 }
  0x56   :  { %v125_v46 = vand.u32 2147483647, %v1580_v22  ;;  %v126_v48 = vand.u32 2147483647, %v1583_v23  ;;  %v1638_v50 = vsub.f32 %v1461_v59, %v88_v11  ;;  %v124_v53 = vand.u32 2147483647, %v1577_v21 }
  0x57   :  { %v127_v34 = vand.u32 2147483647, %v1586_v27  ;;  %v128_v36 = vand.u32 2147483647, %v1589_v4  ;;  %v1644_v57 = vsub.f32 %v1467_v61, %v88_v11  ;;  %v1647_v38 = vsub.f32 %v1476_v0, %v88_v11 }
  0x58   :  { %v129_v41 = vand.u32 2147483647, %v1592_v5  ;;  %v153_v43 = vmax.f32 %v121_v37, %v125_v46  ;;  %v1651_v44 = vsub.f32 %v1488_v7, %v88_v11  ;;  %v1654_v59 = vsub.f32 %v1494_v10, %v88_v11 }
  0x59   :  { %v130_v45 = vand.u32 2147483647, %v1595_v6  ;;  %v154_v47 = vmax.f32 %v122_v39, %v126_v48  ;;  %v1658_v49 = vsub.f32 %v1500_v12, %v88_v11  ;;  %v1661_v61 = vsub.f32 %v1509_v19, %v88_v11 }
  0x5a   :  { %v131_v0 = vand.u32 2147483647, %v1598_v9  ;;  %v155_v51 = vmax.f32 %v123_v42, %v127_v34  ;;  %v1665_v52 = vsub.f32 %v1521_v25, %v88_v11  ;;  %v132_v7 = vand.u32 2147483647, %v1601_v13 }
  0x5b   :  { %1938 = vst [vmem:[#allocation7_spill] sm:$0xff] %v1658_v49  ;;  %v133_v10 = vand.u32 2147483647, %v1604_v15  ;;  %v156_v54 = vmax.f32 %v124_v53, %v128_v36  ;;  %v1670_v55 = vsub.f32 %v1527_v30, %v88_v11  ;;  %v134_v12 = vand.u32 2147483647, %v1607_v17 }
  0x5c   :  { %v1635_v32 = vpop.permute.xlu2 %293  ;;  %v135_v56 = vand.u32 2147483647, %v1610_v20  ;;  %v157_v19 = vmax.f32 %v153_v43, %v129_v41  ;;  %v1675_v58 = vsub.f32 %v1533_v33, %v88_v11  ;;  %v136_v60 = vand.u32 2147483647, %v1613_v24 }
  0x5d   :  { %1939 = vst [vmem:[#allocation8_spill] sm:$0xff] %v1670_v55  ;;  %v137_v25 = vand.u32 2147483647, %v1616_v26  ;;  %v158_v62 = vmax.f32 %v154_v47, %v130_v45  ;;  %v1680_v63 = vsub.f32 %v1542_v40, %v88_v11  ;;  %v138_v1 = vand.u32 2147483647, %v1619_v28 }
  0x5e   :  { %1940 = vst [vmem:[#allocation9_spill] sm:$0xff] %v1675_v58  ;;  %v139_v30 = vand.u32 2147483647, %v1622_v31  ;;  %v159_v2 = vmax.f32 %v155_v51, %v131_v0  ;;  %v140_v3 = vand.u32 2147483647, %v1625_v35  ;;  %v160_v37 = vmax.f32 %v156_v54, %v132_v7 }
  0x5f   :  { %v141_v8 = vand.u32 2147483647, %v1630_v29  ;;  %v161_v33 = vmax.f32 %v157_v19, %v133_v10  ;;  %v142_v42 = vand.u32 2147483647, %v1638_v50  ;;  %v143_v46 = vand.u32 2147483647, %v1644_v57 }
  0x60   :  { %v162_v48 = vmax.f32 %v158_v62, %v134_v12  ;;  %v163_v40 = vmax.f32 %v159_v2, %v135_v56  ;;  %v144_v11 = vand.u32 2147483647, %v1647_v38  ;;  %v145_v53 = vand.u32 2147483647, %v1651_v44 }
  0x61   :  { %v164_v34 = vmax.f32 %v160_v37, %v136_v60  ;;  %v165_v36 = vmax.f32 %v161_v33, %v137_v25  ;;  %v146_v41 = vand.u32 2147483647, %v1654_v59  ;;  %v147_v43 = vand.u32 2147483647, %v1658_v49 }
  0x62   :  { %v166_v45 = vmax.f32 %v162_v48, %v138_v1  ;;  %v167_v47 = vmax.f32 %v163_v40, %v139_v30  ;;  %v148_v0 = vand.u32 2147483647, %v1661_v61  ;;  %v149_v51 = vand.u32 2147483647, %v1665_v52 }
  0x63   :  { %v168_v7 = vmax.f32 %v164_v34, %v140_v3  ;;  %v169_v10 = vmax.f32 %v165_v36, %v141_v8  ;;  %v150_v54 = vand.u32 2147483647, %v1670_v55  ;;  %v151_v12 = vand.u32 2147483647, %v1675_v58 }
  0x64   :  { %v1686_v39 = vpop.permute.xlu2 %298  ;;  %v170_v56 = vmax.f32 %v166_v45, %v142_v42  ;;  %v171_v19 = vmax.f32 %v167_v47, %v143_v46  ;;  %v152_v60 = vand.u32 2147483647, %v1680_v63 }
  0x65   :  { %v172_v25 = vmax.f32 %v168_v7, %v144_v11  ;;  %v173_v62 = vmax.f32 %v169_v10, %v145_v53 }
  0x66   :  { %v174_v2 = vmax.f32 %v170_v56, %v146_v41  ;;  %v175_v37 = vmax.f32 %v171_v19, %v147_v43 }
  0x67   :  { %v176_v1 = vmax.f32 %v172_v25, %v148_v0  ;;  %v177_v30 = vmax.f32 %v173_v62, %v149_v51 }
  0x68   :  { %v178_v48 = vmax.f32 %v174_v2, %v150_v54  ;;  %v179_v40 = vmax.f32 %v175_v37, %v151_v12 }
  0x69   :  { %v180_v49 = vmax.f32 %v176_v1, %v152_v60 }
  0x6a   :  { %v181_v3 = vmax.f32 %v177_v30, %v178_v48 }
  0x6b   :  { %v182_v8 = vmax.f32 %v179_v40, %v180_v49 }
  0x6c   :  { %v314_v33 = vpop.permute.xlu2 %313 }
  0x6d   :  { %v183_v34 = vmax.f32 %v181_v3, %v182_v8 }
  0x6f   :  { %v184_v36 = vrot.slane %v183_v34, 4 }
  0x71   :  { %v185_v46 = vmax.f32 %v183_v34, %v184_v36 }
  0x73   :  { %v186_v45 = vrot.slane %v185_v46, 2 }
  0x74   :  { %v329_v55 = vpop.permute.xlu2 %328 }
  0x75   :  { %v284_v58 = vpop.permute.xlu1 %283  ;;  %v274_v42 = vpop.permute.xlu0 %273  ;;  %v187_v47 = vmax.f32 %v185_v46, %v186_v45 }
  0x77   :  { %v188_v11 = vrot.slane %v187_v47, 1 }
  0x79   :  { %v189_v0 = vmax.f32 %v187_v47, %v188_v11 }
  0x7b   :  { %vm190_vm1 = vcmp.eq.f32.partialorder %v189_v0, 0.0 }
  0x7c   :  { %v344_v53 = vpop.permute.xlu2 %343  ;;  %v1699_v51 = vsel %vm190_vm1, 1.0, %v189_v0 }
  0x7d   :  { %v289_v41 = vpop.permute.xlu1 %288  ;;  %v279_v43 = vpop.permute.xlu0 %278  ;;  %1135 = vrcp.f32 %v1699_v51  ;;  %v203_v56 = vand.u32 2147483648, %v1699_v51  ;;  %vm197_vm2 = vweird.f32 %v1699_v51  ;;  %v201_v60 = vand.u32 2147483647, %v1699_v51 }
  0x7f   :  { %v204_v1 = vor.u32 1.1754944e-38, %v203_v56  ;;  %vm202_vm5 = vcmp.eq.f32.partialorder %v201_v60, 8.507059e+37  ;;  %v1941_v60 = vld [vmem:[#allocation7_spill] sm:$0xff] }
  0x83   :  { %v1136_v54 = vpop.eup %1135 }
  0x84   :  { %v359_v7 = vpop.permute.xlu2 %358  ;;  %v193_v12 = vmul.f32 %v1136_v54, %v1699_v51  ;;  %vm198_vm3 = vweird.f32 %v1136_v54 }
  0x85   :  { %v309_v49 = vpop.permute.xlu1 %308  ;;  %v1702_v10 = vpop.permute.xlu0 %303  ;;  %vm199_vm4 = vmor %vm197_vm2, %vm198_vm3 }
  0x86   :  { %v194_v19 = vsub.f32 1.0, %v193_v12 }
  0x88   :  { %v195_v62 = vmul.f32 %v1136_v54, %v194_v19 }
  0x8a   :  { %v196_v30 = vadd.f32 %v1136_v54, %v195_v62 }
  0x8c   :  { %v374_v25 = vpop.permute.xlu2 %373  ;;  %v200_v48 = vsel %vm199_vm4, %v1136_v54, %v196_v30 }
  0x8d   :  { %v1708_v2 = vpop.permute.xlu1 %323  ;;  %v1710_v37 = vpop.permute.xlu0 %318  ;;  %v1712_v40 = vsel %vm202_vm5, %v204_v1, %v200_v48 }
  0x8e   :  { %v211_v3 = vmul.f32 %v1712_v40, %v1580_v22  ;;  %v212_v8 = vmul.f32 %v1712_v40, %v1583_v23  ;;  %v215_v34 = vmul.f32 %v1712_v40, %v1592_v5  ;;  %v218_v36 = vmul.f32 %v1712_v40, %v1601_v13 }
  0x8f   :  { %v209_v46 = vmul.f32 %v1712_v40, %v1574_v18  ;;  %v207_v45 = vmul.f32 %v1712_v40, %v1568_v14  ;;  %v221_v23 = vmul.f32 %v1712_v40, %v1610_v20  ;;  %v210_v13 = vmul.f32 %v1712_v40, %v1577_v21 }
  0x90   :  { %v435_v11 = vmul.f32 %v1635_v32, %v211_v3  ;;  %v436_v22 = vmul.f32 %v1686_v39, %v212_v8  ;;  %v439_v0 = vmul.f32 %v314_v33, %v215_v34  ;;  %v442_v12 = vmul.f32 %v329_v55, %v218_v36 }
  0x91   :  { %v433_v18 = vmul.f32 %v284_v58, %v209_v46  ;;  %v208_v14 = vmul.f32 %v1712_v40, %v1571_v16  ;;  %v214_v32 = vmul.f32 %v1712_v40, %v1589_v4  ;;  %v431_v39 = vmul.f32 %v274_v42, %v207_v45 }
  0x92   :  { %467 = vst [vmem:[#allocation2 + $0x20] sm:$0xff] %v435_v11  ;;  %v224_v33 = vmul.f32 %v1712_v40, %v1619_v28  ;;  %v216_v20 = vmul.f32 %v1712_v40, %v1595_v6  ;;  %v445_v55 = vmul.f32 %v344_v53, %v221_v23  ;;  %v434_v21 = vmul.f32 %v289_v41, %v210_v13 }
  0x93   :  { %468 = vst [vmem:[#allocation2 + $0x28] sm:$0xff] %v436_v22  ;;  %v213_v58 = vmul.f32 %v1712_v40, %v1586_v27  ;;  %v227_v16 = vmul.f32 %v1712_v40, %v1630_v29  ;;  %v217_v4 = vmul.f32 %v1712_v40, %v1598_v9  ;;  %v432_v42 = vmul.f32 %v279_v43, %v208_v14 }
  0x94   :  { %v389_v47 = vpop.permute.xlu2 %388  ;;  %471 = vst [vmem:[#allocation2 + $0x40] sm:$0xff] %v439_v0  ;;  %v220_v28 = vmul.f32 %v1712_v40, %v1607_v17  ;;  %v219_v6 = vmul.f32 %v1712_v40, %v1604_v15  ;;  %v223_v53 = vmul.f32 %v1712_v40, %v1616_v26  ;;  %v448_v41 = vmul.f32 %v359_v7, %v224_v33 }
  0x95   :  { %v339_v54 = vpop.permute.xlu1 %338  ;;  %v334_v5 = vpop.permute.xlu0 %333  ;;  %474 = vst [vmem:[#allocation2 + $0x58] sm:$0xff] %v442_v12  ;;  %v222_v29 = vmul.f32 %v1712_v40, %v1613_v24  ;;  %v226_v9 = vmul.f32 %v1712_v40, %v1625_v35  ;;  %v225_v43 = vmul.f32 %v1712_v40, %v1622_v31  ;;  %v438_v17 = vmul.f32 %v309_v49, %v214_v32  ;;  %v1943_v32 = vld [vmem:[#allocation9_spill] sm:$0xff] }
  0x96   :  { %465 = vst [vmem:[#allocation2 + $0x10] sm:$0xff] %v433_v18  ;;  %v229_v15 = vmul.f32 %v1712_v40, %v1644_v57  ;;  %v437_v26 = vmul.f32 %v1702_v10, %v213_v58  ;;  %v230_v7 = vmul.f32 %v1712_v40, %v1647_v38  ;;  %v228_v24 = vmul.f32 %v1712_v40, %v1638_v50 }
  0x97   :  { %463 = vst [vmem:[#allocation2] sm:$0xff] %v431_v39  ;;  %v232_v35 = vmul.f32 %v1712_v40, %v1654_v59  ;;  %v451_v31 = vmul.f32 %v374_v25, %v227_v16  ;;  %v231_v49 = vmul.f32 %v1712_v40, %v1651_v44  ;;  %v235_v57 = vmul.f32 %v1712_v40, %v1665_v52  ;;  %v1942_v52 = vld [vmem:[#allocation8_spill] sm:$0xff] }
  0x98   :  { %477 = vst [vmem:[#allocation2 + $0x70] sm:$0xff] %v445_v55  ;;  %v441_v10 = vmul.f32 %v1708_v2, %v217_v4  ;;  %v234_v38 = vmul.f32 %v1712_v40, %v1661_v61  ;;  %v440_v50 = vmul.f32 %v1710_v37, %v216_v20  ;;  %v233_v59 = vmul.f32 %v1712_v40, %v1941_v60 }
  0x99   :  { %466 = vst [vmem:[#allocation2 + $0x18] sm:$0xff] %v434_v21  ;;  %v454_v25 = vmul.f32 %v389_v47, %v230_v7  ;;  %v444_v62 = vmul.f32 %v339_v54, %v220_v28  ;;  %v443_v44 = vmul.f32 %v334_v5, %v219_v6  ;;  %v236_v30 = vmul.f32 %v1712_v40, %v1942_v52 }
  0x9a   :  { %464 = vst [vmem:[#allocation2 + $0x8] sm:$0xff] %v432_v42  ;;  %v238_v14 = vmul.f32 %v1712_v40, %v1680_v63  ;;  %v237_v39 = vmul.f32 %v1712_v40, %v1943_v32  ;;  %v1783_v58 = vmov 0.0   ;;  %v1785_v16 = vmov 0.0  }
  0x9b   :  { %480 = vst [vmem:[#allocation2 + $0x88] sm:$0xff] %v448_v41  ;;  %v1787_v4 = vmov 0.0   ;;  %v1789_v42 = vmov 0.0   ;;  %v1791_v28 = vmov 0.0  }
  0x9c   :  { %v404_v27 = vpop.permute.xlu2 %403  ;;  %470 = vst [vmem:[#allocation2 + $0x38] sm:$0xff] %v438_v17 }
  0x9d   :  { %v354_v56 = vpop.permute.xlu1 %353  ;;  %v349_v19 = vpop.permute.xlu0 %348  ;;  %469 = vst [vmem:[#allocation2 + $0x30] sm:$0xff] %v437_v26  ;;  %v457_v2 = vmul.f32 %v404_v27, %v233_v59 }
  0x9e   :  { %483 = vst [vmem:[#allocation2 + $0xa0] sm:$0xff] %v451_v31  ;;  %v447_v3 = vmul.f32 %v354_v56, %v223_v53  ;;  %v446_v37 = vmul.f32 %v349_v19, %v222_v29 }
  0x9f   :  { %473 = vst [vmem:[#allocation2 + $0x50] sm:$0xff] %v441_v10 }
  0xa0   :  { %472 = vst [vmem:[#allocation2 + $0x48] sm:$0xff] %v440_v50 }
  0xa1   :  { %486 = vst [vmem:[#allocation2 + $0xb8] sm:$0xff] %v454_v25 }
  0xa2   :  { %476 = vst [vmem:[#allocation2 + $0x68] sm:$0xff] %v444_v62 }
  0xa3   :  { %475 = vst [vmem:[#allocation2 + $0x60] sm:$0xff] %v443_v44 }
  0xa4   :  { %v419_v1 = vpop.permute.xlu2 %418  ;;  %489 = vst [vmem:[#allocation2 + $0xd0] sm:$0xff] %v457_v2 }
  0xa5   :  { %v369_v48 = vpop.permute.xlu1 %368  ;;  %v364_v61 = vpop.permute.xlu0 %363  ;;  %v460_v8 = vmul.f32 %v419_v1, %v236_v30  ;;  %479 = vst [vmem:[#allocation2 + $0x80] sm:$0xff] %v447_v3 }
  0xa6   :  { %v450_v34 = vmul.f32 %v369_v48, %v226_v9  ;;  %v449_v36 = vmul.f32 %v364_v61, %v225_v43  ;;  %478 = vst [vmem:[#allocation2 + $0x78] sm:$0xff] %v446_v37 }
  0xa7   :  { %492 = vst [vmem:[#allocation2 + $0xe8] sm:$0xff] %v460_v8 }
  0xa8   :  { %482 = vst [vmem:[#allocation2 + $0x98] sm:$0xff] %v450_v34 }
  0xa9   :  { %481 = vst [vmem:[#allocation2 + $0x90] sm:$0xff] %v449_v36 }
  0xad   :  { %v384_v46 = vpop.permute.xlu1 %383  ;;  %v379_v45 = vpop.permute.xlu0 %378 }
  0xae   :  { %v453_v47 = vmul.f32 %v384_v46, %v229_v15  ;;  %v452_v11 = vmul.f32 %v379_v45, %v228_v24 }
  0xb0   :  { %485 = vst [vmem:[#allocation2 + $0xb0] sm:$0xff] %v453_v47 }
  0xb1   :  { %484 = vst [vmem:[#allocation2 + $0xa8] sm:$0xff] %v452_v11 }
  0xb5   :  { %v399_v22 = vpop.permute.xlu1 %398  ;;  %v394_v0 = vpop.permute.xlu0 %393 }
  0xb6   :  { %v456_v23 = vmul.f32 %v399_v22, %v232_v35  ;;  %v455_v54 = vmul.f32 %v394_v0, %v231_v49 }
  0xb8   :  { %488 = vst [vmem:[#allocation2 + $0xc8] sm:$0xff] %v456_v23 }
  0xb9   :  { %487 = vst [vmem:[#allocation2 + $0xc0] sm:$0xff] %v455_v54 }
  0xbd   :  { %v414_v5 = vpop.permute.xlu1 %413  ;;  %v409_v12 = vpop.permute.xlu0 %408 }
  0xbe   :  { %v459_v13 = vmul.f32 %v414_v5, %v235_v57  ;;  %v458_v18 = vmul.f32 %v409_v12, %v234_v38 }
  0xc0   :  { %491 = vst [vmem:[#allocation2 + $0xe0] sm:$0xff] %v459_v13 }
  0xc1   :  { %490 = vst [vmem:[#allocation2 + $0xd8] sm:$0xff] %v458_v18 }
  0xc5   :  { %v429_v33 = vpop.permute.xlu1 %428  ;;  %v424_v20 = vpop.permute.xlu0 %423 }
  0xc6   :  { %v462_v55 = vmul.f32 %v429_v33, %v238_v14  ;;  %v461_v21 = vmul.f32 %v424_v20, %v237_v39 }
  0xc8   :  { %494 = vst [vmem:[#allocation2 + $0xf8] sm:$0xff] %v462_v55 }
  0xc9   :  { %493 = vst [vmem:[#allocation2 + $0xf0] sm:$0xff] %v461_v21 }
  0xca LB: > { %s1027_s24 = sshll.u32 %s1233_s1, 3  ;;  %v510_v63 = vmul.f32 0.0, %v1229_v28  ;;  %v515_v40 = vmul.f32 -0.11289693, %v1229_v28  ;;  %v523_v29 = vmul.f32 0.056448463, %v1229_v28  ;;  %s1233_s1 = sphi %s1793_s1, %s500_s1   ;;  %v1229_v28 = vphi %v1791_v28, %v1944_v28   ;;  %v1225_v42 = vphi %v1789_v42, %v710_v42   ;;  %v1221_v4 = vphi %v1787_v4, %v690_v4   ;;  %v1217_v16 = vphi %v1785_v16, %v670_v16   ;;  %v1213_v58 = vphi %v1783_v58, %v650_v58  }
  0xcb   : > { %s507_s25 = scalar_lea.vmem [#allocation2], %s1027_s24  ;;  %v528_v56 = vmul.f32 -3.1594634, %v1225_v42  ;;  %v533_v7 = vmul.f32 3.7926843, %v1221_v4  ;;  %vm711_vm6 = vcmask 1040384  }
  0xcc   : > { %v512_v41 = vrot.slane %v510_v63, 7  ;;  %v517_v27 = vrot.slane %v515_v40, 6  ;;  %v520_v17 = vrot.slane %v510_v63, 5  ;;  %v525_v26 = vrot.slane %v523_v29, 4  ;;  %s725_s26 = scalar_lea.vmem [#allocation3], %s1027_s24  ;;  %s500_s1 = sadd.s32 1, %s1233_s1  }
  0xcd   : > { %v530_v35 = vrot.slane %v528_v56, 7  ;;  %v538_v31 = vmul.f32 -2.0825734, %v1217_v16  ;;  %v535_v10 = vrot.slane %v533_v7, 6  ;;  %v543_v38 = vmul.f32 0.45044544, %v1213_v58 }
  0xce   : > { %v561_v2 = vmul.f32 3.7926843, %v1225_v42  ;;  %v566_v3 = vmul.f32 -2.0825734, %v1221_v4  ;;  %v571_v36 = vmul.f32 0.45044544, %v1217_v16 }
  0xcf   : > { %v540_v60 = vrot.slane %v538_v31, 5  ;;  %v545_v62 = vrot.slane %v543_v38, 4  ;;  %v593_v18 = vmul.f32 -2.0825734, %v1225_v42  ;;  %v598_v39 = vmul.f32 0.45044544, %v1221_v4 }
  0xd0   : > { %v1808_v6 = vld [vmem:[%s507_s25] sm:$0xff]   ;;  %v563_v34 = vrot.slane %v561_v2, 6  ;;  %v568_v45 = vrot.slane %v566_v3, 5  ;;  %v573_v22 = vrot.slane %v571_v36, 4  ;;  %v622_v56 = vmul.f32 0.45044544, %v1225_v42 }
  0xd1   : > { %v1811_v53 = vmul.f32 0.056448463, %v1808_v6  ;;  %v548_v9 = vmul.f32 0.0, %v1808_v6  ;;  %v576_v52 = vmul.f32 -0.11289693, %v1808_v6  ;;  %v595_v20 = vrot.slane %v593_v18, 5 }
  0xd2   : > { %v600_v58 = vrot.slane %v598_v39, 4  ;;  %v624_v4 = vrot.slane %v622_v56, 4  ;;  %vm713_vm7 = vcmask 1041408   ;;  %vm715_vm8 = vcmask 1042432   ;;  %p497_p0 = scmp.ge.s32.totalorder %s500_s1, 32  }
  0xd3   : > { %v514_v43 = vadd.f32 %v512_v41, %v1811_v53  ;;  %v550_v19 = vrot.slane %v548_v9, 7  ;;  %v578_v37 = vrot.slane %v576_v52, 6  ;;  %v603_v55 = vrot.slane %v548_v9, 5  ;;  %s1855_s27 = smov (%p497_p0), 0  }
  0xd4   : > { %v628_v9 = vrot.slane %v1811_v53, 4  ;;  %vm717_vm9 = vcmask 1043456   ;;  %vm719_vm10 = vcmask 1044480   ;;  %vm721_vm11 = vcmask 1045504  }
  0xd5   : > { %v519_v15 = vadd.f32 %v517_v27, %v514_v43  ;;  %v552_v49 = vadd.f32 %v550_v19, %v1811_v53  ;;  %vm723_vm12 = vcmask 1046528   ;;  %v1845_v56 = vmov (%p497_p0), 0.0  }
  0xd7   : > { %v522_v24 = vadd.f32 %v520_v17, %v519_v15  ;;  %v553_v59 = vadd.f32 %v552_v49, %v517_v27  ;;  %v580_v47 = vadd.f32 %v578_v37, %v552_v49 }
  0xd9   : > { %v527_v57 = vadd.f32 %v525_v26, %v522_v24  ;;  %v554_v1 = vadd.f32 %v553_v59, %v520_v17  ;;  %v581_v23 = vadd.f32 %v580_v47, %v520_v17  ;;  %v605_v28 = vadd.f32 %v603_v55, %v580_v47 }
  0xdb   : > { %v532_v50 = vsub.f32 %v527_v57, %v530_v35  ;;  %v555_v48 = vadd.f32 %v554_v1, %v525_v26  ;;  %v582_v12 = vadd.f32 %v581_v23, %v525_v26  ;;  %v606_v41 = vadd.f32 %v605_v28, %v525_v26 }
  0xdc   : > { %v630_v49 = vadd.f32 %v628_v9, %v605_v28 }
  0xdd   : > { %v537_v25 = vsub.f32 %v532_v50, %v535_v10 }
  0xdf   : > { %v542_v44 = vsub.f32 %v537_v25, %v540_v60 }
  0xe1   : > { %v547_v30 = vsub.f32 %v542_v44, %v545_v62 }
  0xe3   : > { %v556_v61 = vmul.f32 -3.1594634, %v547_v30  ;;  %v588_v5 = vmul.f32 3.7926843, %v547_v30  ;;  %v617_v29 = vmul.f32 -2.0825734, %v547_v30 }
  0xe4   : > { %v646_v50 = vmul.f32 0.45044544, %v547_v30 }
  0xe5   : > { %v558_v8 = vrot.slane %v556_v61, 7  ;;  %v590_v32 = vrot.slane %v588_v5, 6  ;;  %v619_v15 = vrot.slane %v617_v29, 5 }
  0xe6   : > { %v648_v62 = vrot.slane %v646_v50, 4 }
  0xe7   : > { %v560_v46 = vsub.f32 %v555_v48, %v558_v8 }
  0xe9   : > { %v565_v11 = vsub.f32 %v560_v46, %v563_v34 }
  0xeb   : > { %v570_v0 = vsub.f32 %v565_v11, %v568_v45 }
  0xed   : > { %v575_v54 = vsub.f32 %v570_v0, %v573_v22 }
  0xef   : > { %v583_v13 = vmul.f32 -3.1594634, %v575_v54  ;;  %v612_v40 = vmul.f32 3.7926843, %v575_v54  ;;  %v641_v10 = vmul.f32 -2.0825734, %v575_v54  ;;  %v712_v1 = vsel %vm711_vm6, %v547_v30, %v575_v54 }
  0xf0   : > { %v666_v61 = vmul.f32 0.45044544, %v575_v54 }
  0xf1   : > { %v585_v14 = vrot.slane %v583_v13, 7  ;;  %v614_v17 = vrot.slane %v612_v40, 6  ;;  %v643_v59 = vrot.slane %v641_v10, 5 }
  0xf2   : > { %v668_v34 = vrot.slane %v666_v61, 4 }
  0xf3   : > { %v587_v33 = vsub.f32 %v582_v12, %v585_v14 }
  0xf5   : > { %v592_v21 = vsub.f32 %v587_v33, %v590_v32 }
  0xf7   : > { %v597_v16 = vsub.f32 %v592_v21, %v595_v20 }
  0xf9   : > { %v602_v63 = vsub.f32 %v597_v16, %v600_v58 }
  0xfb   : > { %v607_v27 = vmul.f32 -3.1594634, %v602_v63  ;;  %v636_v31 = vmul.f32 3.7926843, %v602_v63  ;;  %v661_v53 = vmul.f32 -2.0825734, %v602_v63  ;;  %v714_v54 = vsel %vm713_vm7, %v712_v1, %v602_v63 }
  0xfc   : > { %v686_v0 = vmul.f32 0.45044544, %v602_v63 }
  0xfd   : > { %v609_v43 = vrot.slane %v607_v27, 7  ;;  %v638_v26 = vrot.slane %v636_v31, 6  ;;  %v663_v37 = vrot.slane %v661_v53, 5 }
  0xfe   : > { %v688_v12 = vrot.slane %v686_v0, 4 }
  0xff   : > { %v611_v19 = vsub.f32 %v606_v41, %v609_v43 }
 0x101   : > { %v616_v7 = vsub.f32 %v611_v19, %v614_v17  ;;  %v1847_v19 = vmov (%p497_p0), 0.0  }
 0x103   : > { %v621_v24 = vsub.f32 %v616_v7, %v619_v15  ;;  %v1849_v15 = vmov (%p497_p0), 0.0   ;;  %v1851_v7 = vmov (%p497_p0), 0.0  }
 0x105   : > { %v626_v35 = vsub.f32 %v621_v24, %v624_v4  ;;  %v1853_v24 = vmov (%p497_p0), 0.0  }
 0x107   : > { %v631_v57 = vmul.f32 -3.1594634, %v626_v35  ;;  %v656_v44 = vmul.f32 3.7926843, %v626_v35  ;;  %v681_v47 = vmul.f32 -2.0825734, %v626_v35  ;;  %v716_v39 = vsel %vm715_vm8, %v714_v54, %v626_v35 }
 0x108   : > { %v706_v55 = vmul.f32 0.45044544, %v626_v35 }
 0x109   : > { %v633_v38 = vrot.slane %v631_v57, 7  ;;  %v658_v48 = vrot.slane %v656_v44, 6  ;;  %v683_v5 = vrot.slane %v681_v47, 5 }
 0x10a   : > { %v708_v27 = vrot.slane %v706_v55, 4 }
 0x10b   : > { %v635_v60 = vsub.f32 %v630_v49, %v633_v38 }
 0x10d   : > { %v640_v25 = vsub.f32 %v635_v60, %v638_v26 }
 0x10f   : > { %v645_v42 = vsub.f32 %v640_v25, %v643_v59 }
 0x111   : > { %v650_v58 = vsub.f32 %v645_v42, %v648_v62  }
 0x113   : > { %v651_v52 = vmul.f32 -3.1594634, %v650_v58  ;;  %v676_v46 = vmul.f32 3.7926843, %v650_v58  ;;  %v701_v32 = vmul.f32 -2.0825734, %v650_v58  ;;  %v718_v21 = vsel %vm717_vm9, %v716_v39, %v650_v58 }
 0x115   : > { %v653_v2 = vrot.slane %v651_v52, 7  ;;  %v678_v22 = vrot.slane %v676_v46, 6  ;;  %v703_v40 = vrot.slane %v701_v32, 5 }
 0x117   : > { %v655_v3 = vsub.f32 %v630_v49, %v653_v2 }
 0x119   : > { %v660_v8 = vsub.f32 %v655_v3, %v658_v48 }
 0x11b   : > { %v665_v36 = vsub.f32 %v660_v8, %v663_v37 }
 0x11d   : > { %v670_v16 = vsub.f32 %v665_v36, %v668_v34  }
 0x11f   : > { %v671_v45 = vmul.f32 -3.1594634, %v670_v16  ;;  %v696_v18 = vmul.f32 3.7926843, %v670_v16  ;;  %v720_v63 = vsel %vm719_vm10, %v718_v21, %v670_v16 }
 0x121   : > { %v673_v11 = vrot.slane %v671_v45, 7  ;;  %v698_v20 = vrot.slane %v696_v18, 6 }
 0x123   : > { %v675_v23 = vsub.f32 %v630_v49, %v673_v11 }
 0x125   : > { %v680_v30 = vsub.f32 %v675_v23, %v678_v22 }
 0x127   : > { %v685_v13 = vsub.f32 %v680_v30, %v683_v5 }
 0x129   : > { %v690_v4 = vsub.f32 %v685_v13, %v688_v12  }
 0x12b   : > { %v691_v14 = vmul.f32 -3.1594634, %v690_v4  ;;  %v722_v43 = vsel %vm721_vm11, %v720_v63, %v690_v4 }
 0x12d   : > { %v693_v33 = vrot.slane %v691_v14, 7 }
 0x12f   : > { %v695_v28 = vsub.f32 %v630_v49, %v693_v33 }
 0x131   : > { %v700_v41 = vsub.f32 %v695_v28, %v698_v20  ;;  %v1944_v28 = vmov %v1808_v6 }
 0x133   : > { %v705_v29 = vsub.f32 %v700_v41, %v703_v40 }
 0x134   :  { %499 = sbr.rel (!%p497_p0) target bundleno = 202 (0xca), region = 46 }
 0x135   : > { %v710_v42 = vsub.f32 %v705_v29, %v708_v27  }
 0x137   : > { %v724_v17 = vsel %vm723_vm12, %v722_v43, %v710_v42 }
 0x138   : > { %726 = vst [vmem:[%s725_s26] sm:$0xff] %v724_v17 }
 0x139 LB: > { %s738_s28 = ssub.s32 31, %s1257_s27  ;;  %v743_v6 = vmul.f32 0.0, %v1253_v24  ;;  %v748_v58 = vmul.f32 -0.11289693, %v1253_v24  ;;  %v756_v31 = vmul.f32 0.056448463, %v1253_v24  ;;  %s1257_s27 = sphi %s1855_s27, %s732_s27   ;;  %v1253_v24 = vphi %v1853_v24, %v1945_v24   ;;  %v1249_v7 = vphi %v1851_v7, %v943_v7   ;;  %v1245_v15 = vphi %v1849_v15, %v923_v15   ;;  %v1241_v19 = vphi %v1847_v19, %v903_v19   ;;  %v1237_v56 = vphi %v1845_v56, %v883_v56  }
 0x13a   : > { %s1868_s29 = sshll.u32 %s738_s28, 3  ;;  %v761_v38 = vmul.f32 -3.1594634, %v1249_v7  ;;  %v766_v59 = vmul.f32 3.7926843, %v1245_v15  ;;  %s732_s27 = sadd.s32 1, %s1257_s27  }
 0x13b   : > { %s740_s30 = scalar_lea.vmem [#allocation3], %s1868_s29  ;;  %v745_v4 = vrot.slane %v743_v6, 1  ;;  %v750_v35 = vrot.slane %v748_v58, 2  ;;  %v753_v10 = vrot.slane %v743_v6, 3  ;;  %v758_v60 = vrot.slane %v756_v31, 4  ;;  %s959_s3 = scalar_lea.vmem [#allocation4], %s1868_s29 }
 0x13c   : > { %v763_v62 = vrot.slane %v761_v38, 1  ;;  %v771_v42 = vmul.f32 -2.0825734, %v1241_v19  ;;  %v768_v52 = vrot.slane %v766_v59, 2  ;;  %v776_v53 = vmul.f32 0.45044544, %v1237_v56 }
 0x13d   : > { %v794_v45 = vmul.f32 3.7926843, %v1249_v7  ;;  %v799_v22 = vmul.f32 -2.0825734, %v1245_v15  ;;  %v804_v30 = vmul.f32 0.45044544, %v1241_v19 }
 0x13e   : > { %v773_v48 = vrot.slane %v771_v42, 3  ;;  %v778_v37 = vrot.slane %v776_v53, 4  ;;  %v826_v28 = vmul.f32 -2.0825734, %v1249_v7  ;;  %v831_v27 = vmul.f32 0.45044544, %v1245_v15 }
 0x13f   : > { %v1871_v16 = vld [vmem:[%s740_s30] sm:$0xff]   ;;  %v796_v5 = vrot.slane %v794_v45, 2  ;;  %v801_v13 = vrot.slane %v799_v22, 3  ;;  %v806_v14 = vrot.slane %v804_v30, 4  ;;  %v855_v15 = vmul.f32 0.45044544, %v1249_v7 }
 0x140   : > { %v1874_v9 = vmul.f32 0.056448463, %v1871_v16  ;;  %v781_v49 = vmul.f32 0.0, %v1871_v16  ;;  %v809_v36 = vmul.f32 -0.11289693, %v1871_v16  ;;  %v828_v29 = vrot.slane %v826_v28, 3 }
 0x141   : > { %v833_v56 = vrot.slane %v831_v27, 4  ;;  %p729_p1 = scmp.ge.s32.totalorder %s732_s27, 32  }
 0x142   : > { %v747_v57 = vadd.f32 %v745_v4, %v1874_v9  ;;  %v783_v26 = vrot.slane %v781_v49, 1  ;;  %v811_v0 = vrot.slane %v809_v36, 2  ;;  %v836_v43 = vrot.slane %v781_v49, 3  ;;  %s967_s6 = sshll.u32 (%p729_p1), %s1934_s2, 4  ;;  %s1261_s7 = smov (%p729_p1), [#allocation4]   ;;  %s968_s6 = int_to_ptr.hbm [resolvable:$true] %s967_s6 }
 0x143   :  { %s965_s8 = sshll.u32 (%p729_p1), %s1261_s7, 4  ;;  %s1262_s9 = smov (%p729_p1), 128   ;;  %s966_s8 = int_to_ptr.vmem [resolvable:$true] %s965_s8 }
 0x144   : > { %v752_v50 = vadd.f32 %v750_v35, %v747_v57  ;;  %v785_v44 = vadd.f32 %v783_v26, %v1874_v9  ;;  %s1263_s10 = smov (%p729_p1), 8  }
 0x146   : > { %v755_v25 = vadd.f32 %v753_v10, %v752_v50  ;;  %v786_v61 = vadd.f32 %v785_v44, %v750_v35  ;;  %v813_v54 = vadd.f32 %v811_v0, %v785_v44  ;;  %v857_v50 = vrot.slane %v855_v15, 4 }
 0x148   : > { %v760_v1 = vadd.f32 %v758_v60, %v755_v25  ;;  %v787_v34 = vadd.f32 %v786_v61, %v753_v10  ;;  %v814_v39 = vadd.f32 %v813_v54, %v753_v10  ;;  %v838_v24 = vadd.f32 %v836_v43, %v813_v54 }
 0x149   : > { %v861_v25 = vrot.slane %v1874_v9, 4 }
 0x14a   : > { %v765_v2 = vsub.f32 %v760_v1, %v763_v62  ;;  %v788_v47 = vadd.f32 %v787_v34, %v758_v60  ;;  %v815_v55 = vadd.f32 %v814_v39, %v758_v60  ;;  %v839_v4 = vadd.f32 %v838_v24, %v758_v60 }
 0x14b   : > { %v863_v44 = vadd.f32 %v861_v25, %v838_v24 }
 0x14c   : > { %v770_v3 = vsub.f32 %v765_v2, %v768_v52 }
 0x14e   : > { %v775_v8 = vsub.f32 %v770_v3, %v773_v48 }
 0x150   : > { %v1881_v46 = vsub.f32 %v775_v8, %v778_v37 }
 0x152   : > { %v789_v11 = vmul.f32 -3.1594634, %v1881_v46  ;;  %v821_v20 = vmul.f32 3.7926843, %v1881_v46  ;;  %v850_v31 = vmul.f32 -2.0825734, %v1881_v46 }
 0x153   : > { %v879_v2 = vmul.f32 0.45044544, %v1881_v46 }
 0x154   : > { %v791_v23 = vrot.slane %v789_v11, 1  ;;  %v823_v41 = vrot.slane %v821_v20, 2  ;;  %v852_v26 = vrot.slane %v850_v31, 3 }
 0x155   : > { %v881_v3 = vrot.slane %v879_v2, 4 }
 0x156   : > { %v793_v12 = vsub.f32 %v788_v47, %v791_v23 }
 0x158   : > { %v798_v18 = vsub.f32 %v793_v12, %v796_v5 }
 0x15a   : > { %v803_v32 = vsub.f32 %v798_v18, %v801_v13 }
 0x15c   : > { %v1885_v33 = vsub.f32 %v803_v32, %v806_v14 }
 0x15e   : > { %v816_v21 = vmul.f32 -3.1594634, %v1885_v33  ;;  %v845_v58 = vmul.f32 3.7926843, %v1885_v33  ;;  %v874_v1 = vmul.f32 -2.0825734, %v1885_v33 }
 0x15f   : > { %v899_v47 = vmul.f32 0.45044544, %v1885_v33 }
 0x160   : > { %v818_v40 = vrot.slane %v816_v21, 1  ;;  %v847_v10 = vrot.slane %v845_v58, 2  ;;  %v876_v7 = vrot.slane %v874_v1, 3 }
 0x161   : > { %v901_v23 = vrot.slane %v899_v47, 4 }
 0x162   : > { %v820_v63 = vsub.f32 %v815_v55, %v818_v40 }
 0x164   : > { %v825_v17 = vsub.f32 %v820_v63, %v823_v41 }
 0x166   : > { %v830_v19 = vsub.f32 %v825_v17, %v828_v29 }
 0x168   : > { %v1890_v6 = vsub.f32 %v830_v19, %v833_v56 }
 0x16a   : > { %v840_v35 = vmul.f32 -3.1594634, %v1890_v6  ;;  %v869_v42 = vmul.f32 3.7926843, %v1890_v6  ;;  %v894_v9 = vmul.f32 -2.0825734, %v1890_v6 }
 0x16b   : > { %v919_v14 = vmul.f32 0.45044544, %v1890_v6 }
 0x16c   : > { %v842_v57 = vrot.slane %v840_v35, 1  ;;  %v871_v53 = vrot.slane %v869_v42, 2  ;;  %v896_v22 = vrot.slane %v894_v9, 3 }
 0x16d   : > { %v921_v55 = vrot.slane %v919_v14, 4 }
 0x16e   : > { %v844_v38 = vsub.f32 %v839_v4, %v842_v57 }
 0x170   : > { %v849_v49 = vsub.f32 %v844_v38, %v847_v10 }
 0x172   : > { %v854_v59 = vsub.f32 %v849_v49, %v852_v26 }
 0x174   : > { %v859_v62 = vsub.f32 %v854_v59, %v857_v50 }
 0x176   : > { %v864_v60 = vmul.f32 -3.1594634, %v859_v62  ;;  %v889_v8 = vmul.f32 3.7926843, %v859_v62  ;;  %v914_v13 = vmul.f32 -2.0825734, %v859_v62 }
 0x177   : > { %v939_v29 = vmul.f32 0.45044544, %v859_v62 }
 0x178   : > { %v866_v52 = vrot.slane %v864_v60, 1  ;;  %v891_v45 = vrot.slane %v889_v8, 2  ;;  %v916_v39 = vrot.slane %v914_v13, 3 }
 0x179   : > { %v941_v58 = vrot.slane %v939_v29, 4 }
 0x17a   : > { %v868_v48 = vsub.f32 %v863_v44, %v866_v52 }
 0x17c   : > { %v873_v61 = vsub.f32 %v868_v48, %v871_v53 }
 0x17e   : > { %v878_v37 = vsub.f32 %v873_v61, %v876_v7 }
 0x180   : > { %v883_v56 = vsub.f32 %v878_v37, %v881_v3  }
 0x182   : > { %v884_v34 = vmul.f32 -3.1594634, %v883_v56  ;;  %v909_v30 = vmul.f32 3.7926843, %v883_v56  ;;  %v934_v41 = vmul.f32 -2.0825734, %v883_v56 }
 0x184   : > { %v886_v36 = vrot.slane %v884_v34, 1  ;;  %v911_v18 = vrot.slane %v909_v30, 2  ;;  %v936_v17 = vrot.slane %v934_v41, 3 }
 0x186   : > { %v888_v11 = vsub.f32 %v863_v44, %v886_v36 }
 0x188   : > { %v893_v0 = vsub.f32 %v888_v11, %v891_v45 }
 0x18a   : > { %v898_v5 = vsub.f32 %v893_v0, %v896_v22 }
 0x18c   : > { %v903_v19 = vsub.f32 %v898_v5, %v901_v23  }
 0x18e   : > { %v904_v12 = vmul.f32 -3.1594634, %v903_v19  ;;  %v929_v28 = vmul.f32 3.7926843, %v903_v19 }
 0x190   : > { %v906_v54 = vrot.slane %v904_v12, 1  ;;  %v931_v63 = vrot.slane %v929_v28, 2 }
 0x192   : > { %v908_v32 = vsub.f32 %v863_v44, %v906_v54 }
 0x194   : > { %v913_v20 = vsub.f32 %v908_v32, %v911_v18 }
 0x196   : > { %v918_v21 = vsub.f32 %v913_v20, %v916_v39 }
 0x198   : > { %v923_v15 = vsub.f32 %v918_v21, %v921_v55  }
 0x19a   : > { %v924_v40 = vmul.f32 -3.1594634, %v923_v15 }
 0x19c   : > { %v926_v27 = vrot.slane %v924_v40, 1 }
 0x19e   : > { %v928_v43 = vsub.f32 %v863_v44, %v926_v27 }
 0x1a0   : > { %v933_v24 = vsub.f32 %v928_v43, %v931_v63 }
 0x1a2   : > { %v938_v4 = vsub.f32 %v933_v24, %v936_v17  ;;  %v1945_v24 = vmov %v1871_v16 }
 0x1a4   : > { %v943_v7 = vsub.f32 %v938_v4, %v941_v58  }
 0x1a6   : > { %v945_v35 = vsel %vm711_vm6, %v943_v7, %v923_v15 }
 0x1a7   : > { %v947_v31 = vsel %vm713_vm7, %v945_v35, %v903_v19 }
 0x1a8   : > { %v949_v57 = vsel %vm715_vm8, %v947_v31, %v883_v56 }
 0x1a9   : > { %v951_v10 = vsel %vm717_vm9, %v949_v57, %v859_v62 }
 0x1aa   : > { %v953_v38 = vsel %vm719_vm10, %v951_v10, %v1890_v6 }
 0x1ab   : > { %v955_v26 = vsel %vm721_vm11, %v953_v38, %v1885_v33  ;;  %731 = sbr.rel (!%p729_p1) target bundleno = 313 (0x139), region = 57 }
 0x1ac   : > { %v957_v49 = vsel %vm723_vm12, %v955_v26, %v1881_v46 }
 0x1ad   : > { %v958_v50 = vmul.f32 %v957_v49, %v1699_v51 }
 0x1af   : > { %960 = vst [vmem:[%s959_s3] sm:$0xff] %v958_v50 }
 0x1b0   :  { %973 = dma.vmem_to_hbm [thread:$0]  %s966_s8, 4096, %s968_s6, [#allocation5], %s1262_s9, %s1262_s9, %s1263_s10  }
 0x1b1   :  { %1209 = dma.done.wait [#allocation5], 4096  }
 0x1b2   :  { %1210 = vsyncadd [#allocation5], 4294963200 }
 0x1b3   :  { %978 = vsyncpa [#allocation5], 1 }

</bundles_post_ra>
